<compile_context>
chip_gen: v7x
topology: tpu7x:2x2x1
jax: 0.10.0
libtpu: 0.0.40
codegen_flags: <defaults>
</compile_context>

<pallas_src>
import jax
import jax.numpy as jnp
from jax.experimental import pallas as pl
from jax.experimental.pallas import tpu as pltpu

# ---------------- small config consistent with the module's forward ----------------
VOCAB = 100          # stand-in for bert-base-chinese vocab (21128)
SEQ = 8              # sequence length
HIDDEN = 32          # stand-in for 768
N_HEADS = 4          # stand-in for 12
HEAD_DIM = HIDDEN // N_HEADS
FFN = 64             # stand-in for 3072
N_LAYERS = 2         # stand-in for 12
CLS_HIDDEN = 64      # stand-in for hidden_dim = 256
OUT_DIM = 2          # output_dim = 2
LN_EPS = 1e-12       # BERT LayerNorm eps
BATCH = 2
NEG_INF = -1e9


# ---------------- in-kernel helpers ----------------

def _ln(x, g, b):
    """LayerNorm over the last (lane) axis; g/b broadcast as (1, H)."""
    mean = jnp.mean(x, axis=-1, keepdims=True)
    xc = x - mean
    var = jnp.mean(xc * xc, axis=-1, keepdims=True)
    inv = jax.lax.rsqrt(var + jnp.float32(LN_EPS))
    return xc * inv * g + b


def _gelu(x):
    # tanh-approx GELU (EUP-friendly).
    # TODO(synk): HF BERT uses exact erf GELU; parity differs at ~1e-3 level.
    c = jnp.float32(0.7978845608028654)  # sqrt(2/pi)
    return 0.5 * x * (1.0 + jnp.tanh(c * (x + 0.044715 * x * x * x)))


# ---------------- the fused kernel ----------------

def _bert_fused_kernel(
    x_ref,                    # (M, H)      summed embeddings (pre-LN), M = B*S
    bias_ref,                 # (M, M)      additive attn bias (cross-batch + key mask)
    sel_ref,                  # (B, M)      CLS-row selection matrix
    emb_g_ref, emb_b_ref,     # (1, H)
    wqkv_ref, bqkv_ref,       # (L, H, 3H), (L, 1, 3H)
    wo_ref, bo_ref,           # (L, H, H),  (L, 1, H)
    ln1_g_ref, ln1_b_ref,     # (L, 1, H)
    w1_ref, b1_ref,           # (L, H, F),  (L, 1, F)
    w2_ref, b2_ref,           # (L, F, H),  (L, 1, H)
    ln2_g_ref, ln2_b_ref,     # (L, 1, H)
    fc1_w_ref, fc1_b_ref,     # (H, C),     (1, C)
    fc2_w_ref, fc2_b_ref,     # (C, O),     (1, O)
    o_ref,                    # (B, O)
):
    f32 = jnp.float32
    scale = f32(1.0 / (HEAD_DIM ** 0.5))
    bias = bias_ref[...]                                   # loaded once, reused

    # --- embedding LayerNorm ---
    h = _ln(x_ref[...], emb_g_ref[...], emb_b_ref[...])    # (M, H)

    for l in range(N_LAYERS):
        # --- fused QKV projection: one (M,H) @ (H,3H) matmul ---
        qkv = jnp.dot(h, wqkv_ref[l], preferred_element_type=f32) + bqkv_ref[l]

        # --- multi-head self-attention over the flattened token axis ---
        # bias keeps different batches / masked keys at -1e9.
        wo_l = wo_ref[l]
        attn_out = bo_ref[l]                                # (1, H) -> broadcasts
        for hh in range(N_HEADS):
            q = qkv[:, hh * HEAD_DIM:(hh + 1) * HEAD_DIM]
            k = qkv[:, HIDDEN + hh * HEAD_DIM: HIDDEN + (hh + 1) * HEAD_DIM]
            v = qkv[:, 2 * HIDDEN + hh * HEAD_DIM: 2 * HIDDEN + (hh + 1) * HEAD_DIM]
            # scores = q @ k^T  (contract on last dims; no explicit transpose)
            s = jax.lax.dot_general(
                q, k, (((1,), (1,)), ((), ())),
                preferred_element_type=f32) * scale + bias              # (M, M)
            s = s - jnp.max(s, axis=-1, keepdims=True)
            p = jnp.exp(s)
            p = p * pl.reciprocal(jnp.sum(p, axis=-1, keepdims=True), approx=True)
            ctx = jnp.dot(p, v, preferred_element_type=f32)             # (M, Dh)
            # fold the per-head slice of the output projection directly
            # (equivalent to concat(heads) @ Wo, without the concat)
            attn_out = attn_out + jnp.dot(
                ctx, wo_l[hh * HEAD_DIM:(hh + 1) * HEAD_DIM, :],
                preferred_element_type=f32)

        # --- residual + LayerNorm (fused) ---
        h = _ln(h + attn_out, ln1_g_ref[l], ln1_b_ref[l])

        # --- feed-forward ---
        ff = _gelu(jnp.dot(h, w1_ref[l], preferred_element_type=f32) + b1_ref[l])
        ff = jnp.dot(ff, w2_ref[l], preferred_element_type=f32) + b2_ref[l]
        h = _ln(h + ff, ln2_g_ref[l], ln2_b_ref[l])

    # --- epilogue: CLS token rows -> fc1 -> ReLU -> (dropout: identity) -> fc2 ---
    cls = jnp.dot(sel_ref[...], h, preferred_element_type=f32)          # (B, H)
    z = jnp.dot(cls, fc1_w_ref[...], preferred_element_type=f32) + fc1_b_ref[...]
    z = jnp.maximum(z, 0.0)
    # TODO(synk): nn.Dropout(0.1) is identity in eval mode; no kernel needed.
    logits = jnp.dot(z, fc2_w_ref[...], preferred_element_type=f32) + fc2_b_ref[...]
    o_ref[...] = logits.astype(o_ref.dtype)


# ---------------- parameter init (deterministic, synthetic, pre-stacked) ----------------

def init_params(key):
    def nrm(k, shape, scale=0.02):
        return (scale * jax.random.normal(k, shape)).astype(jnp.float32)

    keys = jax.random.split(key, 16)
    return {
        "word_emb": nrm(keys[0], (VOCAB, HIDDEN)),
        "pos_emb": nrm(keys[1], (SEQ, HIDDEN)),
        "type_emb": nrm(keys[2], (2, HIDDEN)),
        "emb_ln_g": jnp.ones((1, HIDDEN), jnp.float32),
        "emb_ln_b": jnp.zeros((1, HIDDEN), jnp.float32),
        # per-layer weights stacked along a leading layer axis
        "wqkv": nrm(keys[3], (N_LAYERS, HIDDEN, 3 * HIDDEN)),
        "bqkv": jnp.zeros((N_LAYERS, 1, 3 * HIDDEN), jnp.float32),
        "wo": nrm(keys[4], (N_LAYERS, HIDDEN, HIDDEN)),
        "bo": jnp.zeros((N_LAYERS, 1, HIDDEN), jnp.float32),
        "ln1_g": jnp.ones((N_LAYERS, 1, HIDDEN), jnp.float32),
        "ln1_b": jnp.zeros((N_LAYERS, 1, HIDDEN), jnp.float32),
        "w1": nrm(keys[5], (N_LAYERS, HIDDEN, FFN)),
        "b1": jnp.zeros((N_LAYERS, 1, FFN), jnp.float32),
        "w2": nrm(keys[6], (N_LAYERS, FFN, HIDDEN)),
        "b2": jnp.zeros((N_LAYERS, 1, HIDDEN), jnp.float32),
        "ln2_g": jnp.ones((N_LAYERS, 1, HIDDEN), jnp.float32),
        "ln2_b": jnp.zeros((N_LAYERS, 1, HIDDEN), jnp.float32),
        "fc1_w": nrm(keys[7], (HIDDEN, CLS_HIDDEN)),
        "fc1_b": jnp.zeros((1, CLS_HIDDEN), jnp.float32),
        "fc2_w": nrm(keys[8], (CLS_HIDDEN, OUT_DIM)),
        "fc2_b": jnp.zeros((1, OUT_DIM), jnp.float32),
    }


# ---------------- forward pass (BertClassifier.forward) ----------------

def bert_classifier_forward(params, input_ids, attention_mask):
    B, S = input_ids.shape
    M = B * S

    # Embedding gather is a data-dependent lookup -> XLA glue (not a Pallas op),
    # plus position / token-type adds (token_type_ids = 0, single segment).
    emb = (params["word_emb"][input_ids]
           + params["pos_emb"][:S][None, :, :]
           + params["type_emb"][0][None, None, :])                  # (B, S, H)
    x = emb.reshape(M, HIDDEN).astype(jnp.float32)

    # Additive attention bias over the flattened token axis:
    # 0 where (same batch AND key attended), -1e9 otherwise.
    batch_ids = jnp.repeat(jnp.arange(B), S)                        # (M,)
    same_batch = batch_ids[:, None] == batch_ids[None, :]
    key_ok = (attention_mask.reshape(M) > 0)[None, :]
    bias = jnp.where(same_batch & key_ok, 0.0, NEG_INF).astype(jnp.float32)   # (M, M)

    # CLS-row selector: picks rows 0, S, 2S, ... via one tiny matmul in-kernel.
    sel = jnp.zeros((B, M), jnp.float32).at[jnp.arange(B), jnp.arange(B) * S].set(1.0)

    vmem = lambda: pl.BlockSpec(memory_space=pltpu.MemorySpace.VMEM)
    logits = pl.pallas_call(
        _bert_fused_kernel,
        out_shape=jax.ShapeDtypeStruct((B, OUT_DIM), jnp.float32),
        in_specs=[vmem() for _ in range(21)],
        out_specs=vmem(),
    )(x, bias, sel,
      params["emb_ln_g"], params["emb_ln_b"],
      params["wqkv"], params["bqkv"],
      params["wo"], params["bo"],
      params["ln1_g"], params["ln1_b"],
      params["w1"], params["b1"],
      params["w2"], params["b2"],
      params["ln2_g"], params["ln2_b"],
      params["fc1_w"], params["fc1_b"],
      params["fc2_w"], params["fc2_b"])
    return logits


# ---------------- pure-JAX reference (same math, standard layout) ----------------

def _reference_forward(params, input_ids, attention_mask):
    hp = jax.lax.Precision.HIGHEST
    B, S = input_ids.shape

    def ln(x, g, b):
        m = jnp.mean(x, -1, keepdims=True)
        v = jnp.mean((x - m) ** 2, -1, keepdims=True)
        return (x - m) * jax.lax.rsqrt(v + jnp.float32(LN_EPS)) * g + b

    def gelu(x):
        c = 0.7978845608028654
        return 0.5 * x * (1.0 + jnp.tanh(c * (x + 0.044715 * x ** 3)))

    emb = (params["word_emb"][input_ids]
           + params["pos_emb"][:S][None, :, :]
           + params["type_emb"][0][None, None, :])
    h = ln(emb, params["emb_ln_g"], params["emb_ln_b"])              # (B, S, H)
    key_bias = jnp.where(attention_mask[:, None, None, :] > 0, 0.0, NEG_INF)

    for l in range(N_LAYERS):
        qkv = jnp.einsum("bsh,hk->bsk", h, params["wqkv"][l], precision=hp) + params["bqkv"][l]
        q, k, v = jnp.split(qkv, 3, axis=-1)

        def heads(t):
            return t.reshape(B, S, N_HEADS, HEAD_DIM).transpose(0, 2, 1, 3)

        s = jnp.einsum("bhqd,bhkd->bhqk", heads(q), heads(k), precision=hp)
        s = s / (HEAD_DIM ** 0.5) + key_bias
        p = jax.nn.softmax(s, axis=-1)
        ctx = jnp.einsum("bhqk,bhkd->bhqd", p, heads(v), precision=hp)
        ctx = ctx.transpose(0, 2, 1, 3).reshape(B, S, HIDDEN)
        attn = jnp.einsum("bsh,hk->bsk", ctx, params["wo"][l], precision=hp) + params["bo"][l]
        h = ln(h + attn, params["ln1_g"][l], params["ln1_b"][l])

        ff = gelu(jnp.einsum("bsh,hf->bsf", h, params["w1"][l], precision=hp) + params["b1"][l])
        ff = jnp.einsum("bsf,fh->bsh", ff, params["w2"][l], precision=hp) + params["b2"][l]
        h = ln(h + ff, params["ln2_g"][l], params["ln2_b"][l])

    cls = h[:, 0, :]
    z = jax.nn.relu(jnp.dot(cls, params["fc1_w"], precision=hp) + params["fc1_b"])
    return jnp.dot(z, params["fc2_w"], precision=hp) + params["fc2_b"]


if __name__ == "__main__":
    key = jax.random.PRNGKey(0)
    pkey, ikey = jax.random.split(key)

    params = init_params(pkey)
    input_ids = jax.random.randint(ikey, (BATCH, SEQ), 0, VOCAB, dtype=jnp.int32)
    attention_mask = jnp.ones((BATCH, SEQ), dtype=jnp.int32)

    logits = jax.jit(bert_classifier_forward)(params, input_ids, attention_mask)
    jax.block_until_ready(logits)

    ref = _reference_forward(params, input_ids, attention_mask)
    assert logits.shape == (BATCH, OUT_DIM)
    assert logits.dtype == jnp.float32
    assert jnp.allclose(logits, ref, atol=5e-3, rtol=5e-2), (logits, ref)
    print("KERNEL_OK")
</pallas_src>

<mosaic_0001>
module attributes {stable_mosaic.version = 11 : i64} {
  func.func @_bert_fused_kernel(%arg0: memref<16x32xf32, #tpu.memory_space<vmem>>, %arg1: memref<16x16xf32, #tpu.memory_space<vmem>>, %arg2: memref<2x16xf32, #tpu.memory_space<vmem>>, %arg3: memref<1x32xf32, #tpu.memory_space<vmem>>, %arg4: memref<1x32xf32, #tpu.memory_space<vmem>>, %arg5: memref<2x32x96xf32, #tpu.memory_space<vmem>>, %arg6: memref<2x1x96xf32, #tpu.memory_space<vmem>>, %arg7: memref<2x32x32xf32, #tpu.memory_space<vmem>>, %arg8: memref<2x1x32xf32, #tpu.memory_space<vmem>>, %arg9: memref<2x1x32xf32, #tpu.memory_space<vmem>>, %arg10: memref<2x1x32xf32, #tpu.memory_space<vmem>>, %arg11: memref<2x32x64xf32, #tpu.memory_space<vmem>>, %arg12: memref<2x1x64xf32, #tpu.memory_space<vmem>>, %arg13: memref<2x64x32xf32, #tpu.memory_space<vmem>>, %arg14: memref<2x1x32xf32, #tpu.memory_space<vmem>>, %arg15: memref<2x1x32xf32, #tpu.memory_space<vmem>>, %arg16: memref<2x1x32xf32, #tpu.memory_space<vmem>>, %arg17: memref<32x64xf32, #tpu.memory_space<vmem>>, %arg18: memref<1x64xf32, #tpu.memory_space<vmem>>, %arg19: memref<64x2xf32, #tpu.memory_space<vmem>>, %arg20: memref<1x2xf32, #tpu.memory_space<vmem>>, %arg21: memref<2x2xf32, #tpu.memory_space<vmem>>) attributes {dimension_semantics = [], scalar_prefetch = 0 : i64, scratch_operands = 0 : i64, tpu.core_type = #tpu.core_type<tc>} {
    %c0 = arith.constant 0 : index
    %c0_0 = arith.constant 0 : index
    %0 = vector.load %arg1[%c0, %c0_0] : memref<16x16xf32, #tpu.memory_space<vmem>>, vector<16x16xf32>
    %c0_1 = arith.constant 0 : index
    %c0_2 = arith.constant 0 : index
    %1 = vector.load %arg0[%c0_1, %c0_2] : memref<16x32xf32, #tpu.memory_space<vmem>>, vector<16x32xf32>
    %c0_3 = arith.constant 0 : index
    %c0_4 = arith.constant 0 : index
    %2 = vector.load %arg3[%c0_3, %c0_4] : memref<1x32xf32, #tpu.memory_space<vmem>>, vector<1x32xf32>
    %c0_5 = arith.constant 0 : index
    %c0_6 = arith.constant 0 : index
    %3 = vector.load %arg4[%c0_5, %c0_6] : memref<1x32xf32, #tpu.memory_space<vmem>>, vector<1x32xf32>
    %cst = arith.constant dense<0.000000e+00> : vector<16xf32>
    %4 = vector.multi_reduction <add>, %1, %cst [1] : vector<16x32xf32> to vector<16xf32>
    %5 = vector.shape_cast %4 : vector<16xf32> to vector<16x1xf32>
    %cst_7 = arith.constant 3.200000e+01 : f32
    %6 = vector.broadcast %cst_7 : f32 to vector<16x1xf32>
    %7 = arith.divf %5, %6 : vector<16x1xf32>
    %8 = vector.broadcast %7 : vector<16x1xf32> to vector<16x32xf32>
    %9 = arith.subf %1, %8 : vector<16x32xf32>
    %10 = arith.mulf %9, %9 : vector<16x32xf32>
    %cst_8 = arith.constant dense<0.000000e+00> : vector<16xf32>
    %11 = vector.multi_reduction <add>, %10, %cst_8 [1] : vector<16x32xf32> to vector<16xf32>
    %12 = vector.shape_cast %11 : vector<16xf32> to vector<16x1xf32>
    %cst_9 = arith.constant 3.200000e+01 : f32
    %13 = vector.broadcast %cst_9 : f32 to vector<16x1xf32>
    %14 = arith.divf %12, %13 : vector<16x1xf32>
    %cst_10 = arith.constant 9.99999996E-13 : f32
    %15 = vector.broadcast %cst_10 : f32 to vector<16x1xf32>
    %16 = arith.addf %14, %15 : vector<16x1xf32>
    %17 = math.rsqrt %16 : vector<16x1xf32>
    %18 = vector.broadcast %17 : vector<16x1xf32> to vector<16x32xf32>
    %19 = arith.mulf %9, %18 : vector<16x32xf32>
    %20 = vector.broadcast %2 : vector<1x32xf32> to vector<16x32xf32>
    %21 = arith.mulf %19, %20 : vector<16x32xf32>
    %22 = vector.broadcast %3 : vector<1x32xf32> to vector<16x32xf32>
    %23 = arith.addf %21, %22 : vector<16x32xf32>
    %c0_11 = arith.constant 0 : index
    %c0_12 = arith.constant 0 : index
    %c0_13 = arith.constant 0 : index
    %24 = vector.load %arg5[%c0_11, %c0_12, %c0_13] : memref<2x32x96xf32, #tpu.memory_space<vmem>>, vector<1x32x96xf32>
    %25 = vector.shape_cast %24 : vector<1x32x96xf32> to vector<32x96xf32>
    %cst_14 = arith.constant dense<0.000000e+00> : vector<16x96xf32>
    %26 = tpu.matmul %23, %25, %cst_14 {dimension_numbers = #tpu.dot_dimension_numbers<[1], [0], [0], [1], [0, 0, 1, 1], [], []>} : vector<16x32xf32>, vector<32x96xf32>, vector<16x96xf32> -> vector<16x96xf32>
    %c0_15 = arith.constant 0 : index
    %c0_16 = arith.constant 0 : index
    %c0_17 = arith.constant 0 : index
    %27 = vector.load %arg6[%c0_15, %c0_16, %c0_17] : memref<2x1x96xf32, #tpu.memory_space<vmem>>, vector<1x1x96xf32>
    %28 = vector.shape_cast %27 : vector<1x1x96xf32> to vector<1x96xf32>
    %29 = vector.broadcast %28 : vector<1x96xf32> to vector<16x96xf32>
    %30 = arith.addf %26, %29 : vector<16x96xf32>
    %c0_18 = arith.constant 0 : index
    %c0_19 = arith.constant 0 : index
    %c0_20 = arith.constant 0 : index
    %31 = vector.load %arg7[%c0_18, %c0_19, %c0_20] : memref<2x32x32xf32, #tpu.memory_space<vmem>>, vector<1x32x32xf32>
    %32 = vector.shape_cast %31 : vector<1x32x32xf32> to vector<32x32xf32>
    %c0_21 = arith.constant 0 : index
    %c0_22 = arith.constant 0 : index
    %c0_23 = arith.constant 0 : index
    %33 = vector.load %arg8[%c0_21, %c0_22, %c0_23] : memref<2x1x32xf32, #tpu.memory_space<vmem>>, vector<1x1x32xf32>
    %34 = vector.shape_cast %33 : vector<1x1x32xf32> to vector<1x32xf32>
    %35 = vector.extract_strided_slice %30 {offsets = [0, 0], sizes = [16, 8], strides = [1, 1]} : vector<16x96xf32> to vector<16x8xf32>
    %36 = vector.extract_strided_slice %30 {offsets = [0, 32], sizes = [16, 8], strides = [1, 1]} : vector<16x96xf32> to vector<16x8xf32>
    %37 = vector.extract_strided_slice %30 {offsets = [0, 64], sizes = [16, 8], strides = [1, 1]} : vector<16x96xf32> to vector<16x8xf32>
    %cst_24 = arith.constant dense<0.000000e+00> : vector<16x16xf32>
    %38 = tpu.matmul %35, %36, %cst_24 {dimension_numbers = #tpu.dot_dimension_numbers<[1], [1], [0], [0], [0, 0, 1, 0], [], []>} : vector<16x8xf32>, vector<16x8xf32>, vector<16x16xf32> -> vector<16x16xf32>
    %cst_25 = arith.constant 0.353553385 : f32
    %39 = vector.broadcast %cst_25 : f32 to vector<16x16xf32>
    %40 = arith.mulf %38, %39 : vector<16x16xf32>
    %41 = arith.addf %40, %0 : vector<16x16xf32>
    %cst_26 = arith.constant dense<0xFF800000> : vector<16xf32>
    %42 = vector.multi_reduction <maximumf>, %41, %cst_26 [1] : vector<16x16xf32> to vector<16xf32>
    %43 = vector.shape_cast %42 : vector<16xf32> to vector<16x1xf32>
    %44 = vector.broadcast %43 : vector<16x1xf32> to vector<16x16xf32>
    %45 = arith.subf %41, %44 : vector<16x16xf32>
    %46 = math.exp %45 : vector<16x16xf32>
    %cst_27 = arith.constant dense<0.000000e+00> : vector<16xf32>
    %47 = vector.multi_reduction <add>, %46, %cst_27 [1] : vector<16x16xf32> to vector<16xf32>
    %48 = vector.shape_cast %47 : vector<16xf32> to vector<16x1xf32>
    %49 = tpu.reciprocal %48 {approx = true} : vector<16x1xf32> -> vector<16x1xf32>
    %50 = vector.broadcast %49 : vector<16x1xf32> to vector<16x16xf32>
    %51 = arith.mulf %46, %50 : vector<16x16xf32>
    %cst_28 = arith.constant dense<0.000000e+00> : vector<16x8xf32>
    %52 = tpu.matmul %51, %37, %cst_28 {dimension_numbers = #tpu.dot_dimension_numbers<[1], [0], [0], [1], [0, 0, 1, 1], [], []>} : vector<16x16xf32>, vector<16x8xf32>, vector<16x8xf32> -> vector<16x8xf32>
    %53 = vector.extract_strided_slice %32 {offsets = [0, 0], sizes = [8, 32], strides = [1, 1]} : vector<32x32xf32> to vector<8x32xf32>
    %cst_29 = arith.constant dense<0.000000e+00> : vector<16x32xf32>
    %54 = tpu.matmul %52, %53, %cst_29 {dimension_numbers = #tpu.dot_dimension_numbers<[1], [0], [0], [1], [0, 0, 1, 1], [], []>} : vector<16x8xf32>, vector<8x32xf32>, vector<16x32xf32> -> vector<16x32xf32>
    %55 = vector.broadcast %34 : vector<1x32xf32> to vector<16x32xf32>
    %56 = arith.addf %55, %54 : vector<16x32xf32>
    %57 = vector.extract_strided_slice %30 {offsets = [0, 8], sizes = [16, 8], strides = [1, 1]} : vector<16x96xf32> to vector<16x8xf32>
    %58 = vector.extract_strided_slice %30 {offsets = [0, 40], sizes = [16, 8], strides = [1, 1]} : vector<16x96xf32> to vector<16x8xf32>
    %59 = vector.extract_strided_slice %30 {offsets = [0, 72], sizes = [16, 8], strides = [1, 1]} : vector<16x96xf32> to vector<16x8xf32>
    %cst_30 = arith.constant dense<0.000000e+00> : vector<16x16xf32>
    %60 = tpu.matmul %57, %58, %cst_30 {dimension_numbers = #tpu.dot_dimension_numbers<[1], [1], [0], [0], [0, 0, 1, 0], [], []>} : vector<16x8xf32>, vector<16x8xf32>, vector<16x16xf32> -> vector<16x16xf32>
    %cst_31 = arith.constant 0.353553385 : f32
    %61 = vector.broadcast %cst_31 : f32 to vector<16x16xf32>
    %62 = arith.mulf %60, %61 : vector<16x16xf32>
    %63 = arith.addf %62, %0 : vector<16x16xf32>
    %cst_32 = arith.constant dense<0xFF800000> : vector<16xf32>
    %64 = vector.multi_reduction <maximumf>, %63, %cst_32 [1] : vector<16x16xf32> to vector<16xf32>
    %65 = vector.shape_cast %64 : vector<16xf32> to vector<16x1xf32>
    %66 = vector.broadcast %65 : vector<16x1xf32> to vector<16x16xf32>
    %67 = arith.subf %63, %66 : vector<16x16xf32>
    %68 = math.exp %67 : vector<16x16xf32>
    %cst_33 = arith.constant dense<0.000000e+00> : vector<16xf32>
    %69 = vector.multi_reduction <add>, %68, %cst_33 [1] : vector<16x16xf32> to vector<16xf32>
    %70 = vector.shape_cast %69 : vector<16xf32> to vector<16x1xf32>
    %71 = tpu.reciprocal %70 {approx = true} : vector<16x1xf32> -> vector<16x1xf32>
    %72 = vector.broadcast %71 : vector<16x1xf32> to vector<16x16xf32>
    %73 = arith.mulf %68, %72 : vector<16x16xf32>
    %cst_34 = arith.constant dense<0.000000e+00> : vector<16x8xf32>
    %74 = tpu.matmul %73, %59, %cst_34 {dimension_numbers = #tpu.dot_dimension_numbers<[1], [0], [0], [1], [0, 0, 1, 1], [], []>} : vector<16x16xf32>, vector<16x8xf32>, vector<16x8xf32> -> vector<16x8xf32>
    %75 = vector.extract_strided_slice %32 {offsets = [8, 0], sizes = [8, 32], strides = [1, 1]} : vector<32x32xf32> to vector<8x32xf32>
    %cst_35 = arith.constant dense<0.000000e+00> : vector<16x32xf32>
    %76 = tpu.matmul %74, %75, %cst_35 {dimension_numbers = #tpu.dot_dimension_numbers<[1], [0], [0], [1], [0, 0, 1, 1], [], []>} : vector<16x8xf32>, vector<8x32xf32>, vector<16x32xf32> -> vector<16x32xf32>
    %77 = arith.addf %56, %76 : vector<16x32xf32>
    %78 = vector.extract_strided_slice %30 {offsets = [0, 16], sizes = [16, 8], strides = [1, 1]} : vector<16x96xf32> to vector<16x8xf32>
    %79 = vector.extract_strided_slice %30 {offsets = [0, 48], sizes = [16, 8], strides = [1, 1]} : vector<16x96xf32> to vector<16x8xf32>
    %80 = vector.extract_strided_slice %30 {offsets = [0, 80], sizes = [16, 8], strides = [1, 1]} : vector<16x96xf32> to vector<16x8xf32>
    %cst_36 = arith.constant dense<0.000000e+00> : vector<16x16xf32>
    %81 = tpu.matmul %78, %79, %cst_36 {dimension_numbers = #tpu.dot_dimension_numbers<[1], [1], [0], [0], [0, 0, 1, 0], [], []>} : vector<16x8xf32>, vector<16x8xf32>, vector<16x16xf32> -> vector<16x16xf32>
    %cst_37 = arith.constant 0.353553385 : f32
    %82 = vector.broadcast %cst_37 : f32 to vector<16x16xf32>
    %83 = arith.mulf %81, %82 : vector<16x16xf32>
    %84 = arith.addf %83, %0 : vector<16x16xf32>
    %cst_38 = arith.constant dense<0xFF800000> : vector<16xf32>
    %85 = vector.multi_reduction <maximumf>, %84, %cst_38 [1] : vector<16x16xf32> to vector<16xf32>
    %86 = vector.shape_cast %85 : vector<16xf32> to vector<16x1xf32>
    %87 = vector.broadcast %86 : vector<16x1xf32> to vector<16x16xf32>
    %88 = arith.subf %84, %87 : vector<16x16xf32>
    %89 = math.exp %88 : vector<16x16xf32>
    %cst_39 = arith.constant dense<0.000000e+00> : vector<16xf32>
    %90 = vector.multi_reduction <add>, %89, %cst_39 [1] : vector<16x16xf32> to vector<16xf32>
    %91 = vector.shape_cast %90 : vector<16xf32> to vector<16x1xf32>
    %92 = tpu.reciprocal %91 {approx = true} : vector<16x1xf32> -> vector<16x1xf32>
    %93 = vector.broadcast %92 : vector<16x1xf32> to vector<16x16xf32>
    %94 = arith.mulf %89, %93 : vector<16x16xf32>
    %cst_40 = arith.constant dense<0.000000e+00> : vector<16x8xf32>
    %95 = tpu.matmul %94, %80, %cst_40 {dimension_numbers = #tpu.dot_dimension_numbers<[1], [0], [0], [1], [0, 0, 1, 1], [], []>} : vector<16x16xf32>, vector<16x8xf32>, vector<16x8xf32> -> vector<16x8xf32>
    %96 = vector.extract_strided_slice %32 {offsets = [16, 0], sizes = [8, 32], strides = [1, 1]} : vector<32x32xf32> to vector<8x32xf32>
    %cst_41 = arith.constant dense<0.000000e+00> : vector<16x32xf32>
    %97 = tpu.matmul %95, %96, %cst_41 {dimension_numbers = #tpu.dot_dimension_numbers<[1], [0], [0], [1], [0, 0, 1, 1], [], []>} : vector<16x8xf32>, vector<8x32xf32>, vector<16x32xf32> -> vector<16x32xf32>
    %98 = arith.addf %77, %97 : vector<16x32xf32>
    %99 = vector.extract_strided_slice %30 {offsets = [0, 24], sizes = [16, 8], strides = [1, 1]} : vector<16x96xf32> to vector<16x8xf32>
    %100 = vector.extract_strided_slice %30 {offsets = [0, 56], sizes = [16, 8], strides = [1, 1]} : vector<16x96xf32> to vector<16x8xf32>
    %101 = vector.extract_strided_slice %30 {offsets = [0, 88], sizes = [16, 8], strides = [1, 1]} : vector<16x96xf32> to vector<16x8xf32>
    %cst_42 = arith.constant dense<0.000000e+00> : vector<16x16xf32>
    %102 = tpu.matmul %99, %100, %cst_42 {dimension_numbers = #tpu.dot_dimension_numbers<[1], [1], [0], [0], [0, 0, 1, 0], [], []>} : vector<16x8xf32>, vector<16x8xf32>, vector<16x16xf32> -> vector<16x16xf32>
    %cst_43 = arith.constant 0.353553385 : f32
    %103 = vector.broadcast %cst_43 : f32 to vector<16x16xf32>
    %104 = arith.mulf %102, %103 : vector<16x16xf32>
    %105 = arith.addf %104, %0 : vector<16x16xf32>
    %cst_44 = arith.constant dense<0xFF800000> : vector<16xf32>
    %106 = vector.multi_reduction <maximumf>, %105, %cst_44 [1] : vector<16x16xf32> to vector<16xf32>
    %107 = vector.shape_cast %106 : vector<16xf32> to vector<16x1xf32>
    %108 = vector.broadcast %107 : vector<16x1xf32> to vector<16x16xf32>
    %109 = arith.subf %105, %108 : vector<16x16xf32>
    %110 = math.exp %109 : vector<16x16xf32>
    %cst_45 = arith.constant dense<0.000000e+00> : vector<16xf32>
    %111 = vector.multi_reduction <add>, %110, %cst_45 [1] : vector<16x16xf32> to vector<16xf32>
    %112 = vector.shape_cast %111 : vector<16xf32> to vector<16x1xf32>
    %113 = tpu.reciprocal %112 {approx = true} : vector<16x1xf32> -> vector<16x1xf32>
    %114 = vector.broadcast %113 : vector<16x1xf32> to vector<16x16xf32>
    %115 = arith.mulf %110, %114 : vector<16x16xf32>
    %cst_46 = arith.constant dense<0.000000e+00> : vector<16x8xf32>
    %116 = tpu.matmul %115, %101, %cst_46 {dimension_numbers = #tpu.dot_dimension_numbers<[1], [0], [0], [1], [0, 0, 1, 1], [], []>} : vector<16x16xf32>, vector<16x8xf32>, vector<16x8xf32> -> vector<16x8xf32>
    %117 = vector.extract_strided_slice %32 {offsets = [24, 0], sizes = [8, 32], strides = [1, 1]} : vector<32x32xf32> to vector<8x32xf32>
    %cst_47 = arith.constant dense<0.000000e+00> : vector<16x32xf32>
    %118 = tpu.matmul %116, %117, %cst_47 {dimension_numbers = #tpu.dot_dimension_numbers<[1], [0], [0], [1], [0, 0, 1, 1], [], []>} : vector<16x8xf32>, vector<8x32xf32>, vector<16x32xf32> -> vector<16x32xf32>
    %119 = arith.addf %98, %118 : vector<16x32xf32>
    %120 = arith.addf %23, %119 : vector<16x32xf32>
    %c0_48 = arith.constant 0 : index
    %c0_49 = arith.constant 0 : index
    %c0_50 = arith.constant 0 : index
    %121 = vector.load %arg9[%c0_48, %c0_49, %c0_50] : memref<2x1x32xf32, #tpu.memory_space<vmem>>, vector<1x1x32xf32>
    %122 = vector.shape_cast %121 : vector<1x1x32xf32> to vector<1x32xf32>
    %c0_51 = arith.constant 0 : index
    %c0_52 = arith.constant 0 : index
    %c0_53 = arith.constant 0 : index
    %123 = vector.load %arg10[%c0_51, %c0_52, %c0_53] : memref<2x1x32xf32, #tpu.memory_space<vmem>>, vector<1x1x32xf32>
    %124 = vector.shape_cast %123 : vector<1x1x32xf32> to vector<1x32xf32>
    %cst_54 = arith.constant dense<0.000000e+00> : vector<16xf32>
    %125 = vector.multi_reduction <add>, %120, %cst_54 [1] : vector<16x32xf32> to vector<16xf32>
    %126 = vector.shape_cast %125 : vector<16xf32> to vector<16x1xf32>
    %cst_55 = arith.constant 3.200000e+01 : f32
    %127 = vector.broadcast %cst_55 : f32 to vector<16x1xf32>
    %128 = arith.divf %126, %127 : vector<16x1xf32>
    %129 = vector.broadcast %128 : vector<16x1xf32> to vector<16x32xf32>
    %130 = arith.subf %120, %129 : vector<16x32xf32>
    %131 = arith.mulf %130, %130 : vector<16x32xf32>
    %cst_56 = arith.constant dense<0.000000e+00> : vector<16xf32>
    %132 = vector.multi_reduction <add>, %131, %cst_56 [1] : vector<16x32xf32> to vector<16xf32>
    %133 = vector.shape_cast %132 : vector<16xf32> to vector<16x1xf32>
    %cst_57 = arith.constant 3.200000e+01 : f32
    %134 = vector.broadcast %cst_57 : f32 to vector<16x1xf32>
    %135 = arith.divf %133, %134 : vector<16x1xf32>
    %cst_58 = arith.constant 9.99999996E-13 : f32
    %136 = vector.broadcast %cst_58 : f32 to vector<16x1xf32>
    %137 = arith.addf %135, %136 : vector<16x1xf32>
    %138 = math.rsqrt %137 : vector<16x1xf32>
    %139 = vector.broadcast %138 : vector<16x1xf32> to vector<16x32xf32>
    %140 = arith.mulf %130, %139 : vector<16x32xf32>
    %141 = vector.broadcast %122 : vector<1x32xf32> to vector<16x32xf32>
    %142 = arith.mulf %140, %141 : vector<16x32xf32>
    %143 = vector.broadcast %124 : vector<1x32xf32> to vector<16x32xf32>
    %144 = arith.addf %142, %143 : vector<16x32xf32>
    %c0_59 = arith.constant 0 : index
    %c0_60 = arith.constant 0 : index
    %c0_61 = arith.constant 0 : index
    %145 = vector.load %arg11[%c0_59, %c0_60, %c0_61] : memref<2x32x64xf32, #tpu.memory_space<vmem>>, vector<1x32x64xf32>
    %146 = vector.shape_cast %145 : vector<1x32x64xf32> to vector<32x64xf32>
    %cst_62 = arith.constant dense<0.000000e+00> : vector<16x64xf32>
    %147 = tpu.matmul %144, %146, %cst_62 {dimension_numbers = #tpu.dot_dimension_numbers<[1], [0], [0], [1], [0, 0, 1, 1], [], []>} : vector<16x32xf32>, vector<32x64xf32>, vector<16x64xf32> -> vector<16x64xf32>
    %c0_63 = arith.constant 0 : index
    %c0_64 = arith.constant 0 : index
    %c0_65 = arith.constant 0 : index
    %148 = vector.load %arg12[%c0_63, %c0_64, %c0_65] : memref<2x1x64xf32, #tpu.memory_space<vmem>>, vector<1x1x64xf32>
    %149 = vector.shape_cast %148 : vector<1x1x64xf32> to vector<1x64xf32>
    %150 = vector.broadcast %149 : vector<1x64xf32> to vector<16x64xf32>
    %151 = arith.addf %147, %150 : vector<16x64xf32>
    %cst_66 = arith.constant 5.000000e-01 : f32
    %152 = vector.broadcast %cst_66 : f32 to vector<16x64xf32>
    %153 = arith.mulf %152, %151 : vector<16x64xf32>
    %cst_67 = arith.constant 4.471500e-02 : f32
    %154 = vector.broadcast %cst_67 : f32 to vector<16x64xf32>
    %155 = arith.mulf %154, %151 : vector<16x64xf32>
    %156 = arith.mulf %155, %151 : vector<16x64xf32>
    %157 = arith.mulf %156, %151 : vector<16x64xf32>
    %158 = arith.addf %151, %157 : vector<16x64xf32>
    %cst_68 = arith.constant 0.797884583 : f32
    %159 = vector.broadcast %cst_68 : f32 to vector<16x64xf32>
    %160 = arith.mulf %159, %158 : vector<16x64xf32>
    %161 = math.tanh %160 : vector<16x64xf32>
    %cst_69 = arith.constant 1.000000e+00 : f32
    %162 = vector.broadcast %cst_69 : f32 to vector<16x64xf32>
    %163 = arith.addf %162, %161 : vector<16x64xf32>
    %164 = arith.mulf %153, %163 : vector<16x64xf32>
    %c0_70 = arith.constant 0 : index
    %c0_71 = arith.constant 0 : index
    %c0_72 = arith.constant 0 : index
    %165 = vector.load %arg13[%c0_70, %c0_71, %c0_72] : memref<2x64x32xf32, #tpu.memory_space<vmem>>, vector<1x64x32xf32>
    %166 = vector.shape_cast %165 : vector<1x64x32xf32> to vector<64x32xf32>
    %cst_73 = arith.constant dense<0.000000e+00> : vector<16x32xf32>
    %167 = tpu.matmul %164, %166, %cst_73 {dimension_numbers = #tpu.dot_dimension_numbers<[1], [0], [0], [1], [0, 0, 1, 1], [], []>} : vector<16x64xf32>, vector<64x32xf32>, vector<16x32xf32> -> vector<16x32xf32>
    %c0_74 = arith.constant 0 : index
    %c0_75 = arith.constant 0 : index
    %c0_76 = arith.constant 0 : index
    %168 = vector.load %arg14[%c0_74, %c0_75, %c0_76] : memref<2x1x32xf32, #tpu.memory_space<vmem>>, vector<1x1x32xf32>
    %169 = vector.shape_cast %168 : vector<1x1x32xf32> to vector<1x32xf32>
    %170 = vector.broadcast %169 : vector<1x32xf32> to vector<16x32xf32>
    %171 = arith.addf %167, %170 : vector<16x32xf32>
    %172 = arith.addf %144, %171 : vector<16x32xf32>
    %c0_77 = arith.constant 0 : index
    %c0_78 = arith.constant 0 : index
    %c0_79 = arith.constant 0 : index
    %173 = vector.load %arg15[%c0_77, %c0_78, %c0_79] : memref<2x1x32xf32, #tpu.memory_space<vmem>>, vector<1x1x32xf32>
    %174 = vector.shape_cast %173 : vector<1x1x32xf32> to vector<1x32xf32>
    %c0_80 = arith.constant 0 : index
    %c0_81 = arith.constant 0 : index
    %c0_82 = arith.constant 0 : index
    %175 = vector.load %arg16[%c0_80, %c0_81, %c0_82] : memref<2x1x32xf32, #tpu.memory_space<vmem>>, vector<1x1x32xf32>
    %176 = vector.shape_cast %175 : vector<1x1x32xf32> to vector<1x32xf32>
    %cst_83 = arith.constant dense<0.000000e+00> : vector<16xf32>
    %177 = vector.multi_reduction <add>, %172, %cst_83 [1] : vector<16x32xf32> to vector<16xf32>
    %178 = vector.shape_cast %177 : vector<16xf32> to vector<16x1xf32>
    %cst_84 = arith.constant 3.200000e+01 : f32
    %179 = vector.broadcast %cst_84 : f32 to vector<16x1xf32>
    %180 = arith.divf %178, %179 : vector<16x1xf32>
    %181 = vector.broadcast %180 : vector<16x1xf32> to vector<16x32xf32>
    %182 = arith.subf %172, %181 : vector<16x32xf32>
    %183 = arith.mulf %182, %182 : vector<16x32xf32>
    %cst_85 = arith.constant dense<0.000000e+00> : vector<16xf32>
    %184 = vector.multi_reduction <add>, %183, %cst_85 [1] : vector<16x32xf32> to vector<16xf32>
    %185 = vector.shape_cast %184 : vector<16xf32> to vector<16x1xf32>
    %cst_86 = arith.constant 3.200000e+01 : f32
    %186 = vector.broadcast %cst_86 : f32 to vector<16x1xf32>
    %187 = arith.divf %185, %186 : vector<16x1xf32>
    %cst_87 = arith.constant 9.99999996E-13 : f32
    %188 = vector.broadcast %cst_87 : f32 to vector<16x1xf32>
    %189 = arith.addf %187, %188 : vector<16x1xf32>
    %190 = math.rsqrt %189 : vector<16x1xf32>
    %191 = vector.broadcast %190 : vector<16x1xf32> to vector<16x32xf32>
    %192 = arith.mulf %182, %191 : vector<16x32xf32>
    %193 = vector.broadcast %174 : vector<1x32xf32> to vector<16x32xf32>
    %194 = arith.mulf %192, %193 : vector<16x32xf32>
    %195 = vector.broadcast %176 : vector<1x32xf32> to vector<16x32xf32>
    %196 = arith.addf %194, %195 : vector<16x32xf32>
    %c1 = arith.constant 1 : index
    %c0_88 = arith.constant 0 : index
    %c0_89 = arith.constant 0 : index
    %197 = vector.load %arg5[%c1, %c0_88, %c0_89] : memref<2x32x96xf32, #tpu.memory_space<vmem>>, vector<1x32x96xf32>
    %198 = vector.shape_cast %197 : vector<1x32x96xf32> to vector<32x96xf32>
    %cst_90 = arith.constant dense<0.000000e+00> : vector<16x96xf32>
    %199 = tpu.matmul %196, %198, %cst_90 {dimension_numbers = #tpu.dot_dimension_numbers<[1], [0], [0], [1], [0, 0, 1, 1], [], []>} : vector<16x32xf32>, vector<32x96xf32>, vector<16x96xf32> -> vector<16x96xf32>
    %c1_91 = arith.constant 1 : index
    %c0_92 = arith.constant 0 : index
    %c0_93 = arith.constant 0 : index
    %200 = vector.load %arg6[%c1_91, %c0_92, %c0_93] : memref<2x1x96xf32, #tpu.memory_space<vmem>>, vector<1x1x96xf32>
    %201 = vector.shape_cast %200 : vector<1x1x96xf32> to vector<1x96xf32>
    %202 = vector.broadcast %201 : vector<1x96xf32> to vector<16x96xf32>
    %203 = arith.addf %199, %202 : vector<16x96xf32>
    %c1_94 = arith.constant 1 : index
    %c0_95 = arith.constant 0 : index
    %c0_96 = arith.constant 0 : index
    %204 = vector.load %arg7[%c1_94, %c0_95, %c0_96] : memref<2x32x32xf32, #tpu.memory_space<vmem>>, vector<1x32x32xf32>
    %205 = vector.shape_cast %204 : vector<1x32x32xf32> to vector<32x32xf32>
    %c1_97 = arith.constant 1 : index
    %c0_98 = arith.constant 0 : index
    %c0_99 = arith.constant 0 : index
    %206 = vector.load %arg8[%c1_97, %c0_98, %c0_99] : memref<2x1x32xf32, #tpu.memory_space<vmem>>, vector<1x1x32xf32>
    %207 = vector.shape_cast %206 : vector<1x1x32xf32> to vector<1x32xf32>
    %208 = vector.extract_strided_slice %203 {offsets = [0, 0], sizes = [16, 8], strides = [1, 1]} : vector<16x96xf32> to vector<16x8xf32>
    %209 = vector.extract_strided_slice %203 {offsets = [0, 32], sizes = [16, 8], strides = [1, 1]} : vector<16x96xf32> to vector<16x8xf32>
    %210 = vector.extract_strided_slice %203 {offsets = [0, 64], sizes = [16, 8], strides = [1, 1]} : vector<16x96xf32> to vector<16x8xf32>
    %cst_100 = arith.constant dense<0.000000e+00> : vector<16x16xf32>
    %211 = tpu.matmul %208, %209, %cst_100 {dimension_numbers = #tpu.dot_dimension_numbers<[1], [1], [0], [0], [0, 0, 1, 0], [], []>} : vector<16x8xf32>, vector<16x8xf32>, vector<16x16xf32> -> vector<16x16xf32>
    %cst_101 = arith.constant 0.353553385 : f32
    %212 = vector.broadcast %cst_101 : f32 to vector<16x16xf32>
    %213 = arith.mulf %211, %212 : vector<16x16xf32>
    %214 = arith.addf %213, %0 : vector<16x16xf32>
    %cst_102 = arith.constant dense<0xFF800000> : vector<16xf32>
    %215 = vector.multi_reduction <maximumf>, %214, %cst_102 [1] : vector<16x16xf32> to vector<16xf32>
    %216 = vector.shape_cast %215 : vector<16xf32> to vector<16x1xf32>
    %217 = vector.broadcast %216 : vector<16x1xf32> to vector<16x16xf32>
    %218 = arith.subf %214, %217 : vector<16x16xf32>
    %219 = math.exp %218 : vector<16x16xf32>
    %cst_103 = arith.constant dense<0.000000e+00> : vector<16xf32>
    %220 = vector.multi_reduction <add>, %219, %cst_103 [1] : vector<16x16xf32> to vector<16xf32>
    %221 = vector.shape_cast %220 : vector<16xf32> to vector<16x1xf32>
    %222 = tpu.reciprocal %221 {approx = true} : vector<16x1xf32> -> vector<16x1xf32>
    %223 = vector.broadcast %222 : vector<16x1xf32> to vector<16x16xf32>
    %224 = arith.mulf %219, %223 : vector<16x16xf32>
    %cst_104 = arith.constant dense<0.000000e+00> : vector<16x8xf32>
    %225 = tpu.matmul %224, %210, %cst_104 {dimension_numbers = #tpu.dot_dimension_numbers<[1], [0], [0], [1], [0, 0, 1, 1], [], []>} : vector<16x16xf32>, vector<16x8xf32>, vector<16x8xf32> -> vector<16x8xf32>
    %226 = vector.extract_strided_slice %205 {offsets = [0, 0], sizes = [8, 32], strides = [1, 1]} : vector<32x32xf32> to vector<8x32xf32>
    %cst_105 = arith.constant dense<0.000000e+00> : vector<16x32xf32>
    %227 = tpu.matmul %225, %226, %cst_105 {dimension_numbers = #tpu.dot_dimension_numbers<[1], [0], [0], [1], [0, 0, 1, 1], [], []>} : vector<16x8xf32>, vector<8x32xf32>, vector<16x32xf32> -> vector<16x32xf32>
    %228 = vector.broadcast %207 : vector<1x32xf32> to vector<16x32xf32>
    %229 = arith.addf %228, %227 : vector<16x32xf32>
    %230 = vector.extract_strided_slice %203 {offsets = [0, 8], sizes = [16, 8], strides = [1, 1]} : vector<16x96xf32> to vector<16x8xf32>
    %231 = vector.extract_strided_slice %203 {offsets = [0, 40], sizes = [16, 8], strides = [1, 1]} : vector<16x96xf32> to vector<16x8xf32>
    %232 = vector.extract_strided_slice %203 {offsets = [0, 72], sizes = [16, 8], strides = [1, 1]} : vector<16x96xf32> to vector<16x8xf32>
    %cst_106 = arith.constant dense<0.000000e+00> : vector<16x16xf32>
    %233 = tpu.matmul %230, %231, %cst_106 {dimension_numbers = #tpu.dot_dimension_numbers<[1], [1], [0], [0], [0, 0, 1, 0], [], []>} : vector<16x8xf32>, vector<16x8xf32>, vector<16x16xf32> -> vector<16x16xf32>
    %cst_107 = arith.constant 0.353553385 : f32
    %234 = vector.broadcast %cst_107 : f32 to vector<16x16xf32>
    %235 = arith.mulf %233, %234 : vector<16x16xf32>
    %236 = arith.addf %235, %0 : vector<16x16xf32>
    %cst_108 = arith.constant dense<0xFF800000> : vector<16xf32>
    %237 = vector.multi_reduction <maximumf>, %236, %cst_108 [1] : vector<16x16xf32> to vector<16xf32>
    %238 = vector.shape_cast %237 : vector<16xf32> to vector<16x1xf32>
    %239 = vector.broadcast %238 : vector<16x1xf32> to vector<16x16xf32>
    %240 = arith.subf %236, %239 : vector<16x16xf32>
    %241 = math.exp %240 : vector<16x16xf32>
    %cst_109 = arith.constant dense<0.000000e+00> : vector<16xf32>
    %242 = vector.multi_reduction <add>, %241, %cst_109 [1] : vector<16x16xf32> to vector<16xf32>
    %243 = vector.shape_cast %242 : vector<16xf32> to vector<16x1xf32>
    %244 = tpu.reciprocal %243 {approx = true} : vector<16x1xf32> -> vector<16x1xf32>
    %245 = vector.broadcast %244 : vector<16x1xf32> to vector<16x16xf32>
    %246 = arith.mulf %241, %245 : vector<16x16xf32>
    %cst_110 = arith.constant dense<0.000000e+00> : vector<16x8xf32>
    %247 = tpu.matmul %246, %232, %cst_110 {dimension_numbers = #tpu.dot_dimension_numbers<[1], [0], [0], [1], [0, 0, 1, 1], [], []>} : vector<16x16xf32>, vector<16x8xf32>, vector<16x8xf32> -> vector<16x8xf32>
    %248 = vector.extract_strided_slice %205 {offsets = [8, 0], sizes = [8, 32], strides = [1, 1]} : vector<32x32xf32> to vector<8x32xf32>
    %cst_111 = arith.constant dense<0.000000e+00> : vector<16x32xf32>
    %249 = tpu.matmul %247, %248, %cst_111 {dimension_numbers = #tpu.dot_dimension_numbers<[1], [0], [0], [1], [0, 0, 1, 1], [], []>} : vector<16x8xf32>, vector<8x32xf32>, vector<16x32xf32> -> vector<16x32xf32>
    %250 = arith.addf %229, %249 : vector<16x32xf32>
    %251 = vector.extract_strided_slice %203 {offsets = [0, 16], sizes = [16, 8], strides = [1, 1]} : vector<16x96xf32> to vector<16x8xf32>
    %252 = vector.extract_strided_slice %203 {offsets = [0, 48], sizes = [16, 8], strides = [1, 1]} : vector<16x96xf32> to vector<16x8xf32>
    %253 = vector.extract_strided_slice %203 {offsets = [0, 80], sizes = [16, 8], strides = [1, 1]} : vector<16x96xf32> to vector<16x8xf32>
    %cst_112 = arith.constant dense<0.000000e+00> : vector<16x16xf32>
    %254 = tpu.matmul %251, %252, %cst_112 {dimension_numbers = #tpu.dot_dimension_numbers<[1], [1], [0], [0], [0, 0, 1, 0], [], []>} : vector<16x8xf32>, vector<16x8xf32>, vector<16x16xf32> -> vector<16x16xf32>
    %cst_113 = arith.constant 0.353553385 : f32
    %255 = vector.broadcast %cst_113 : f32 to vector<16x16xf32>
    %256 = arith.mulf %254, %255 : vector<16x16xf32>
    %257 = arith.addf %256, %0 : vector<16x16xf32>
    %cst_114 = arith.constant dense<0xFF800000> : vector<16xf32>
    %258 = vector.multi_reduction <maximumf>, %257, %cst_114 [1] : vector<16x16xf32> to vector<16xf32>
    %259 = vector.shape_cast %258 : vector<16xf32> to vector<16x1xf32>
    %260 = vector.broadcast %259 : vector<16x1xf32> to vector<16x16xf32>
    %261 = arith.subf %257, %260 : vector<16x16xf32>
    %262 = math.exp %261 : vector<16x16xf32>
    %cst_115 = arith.constant dense<0.000000e+00> : vector<16xf32>
    %263 = vector.multi_reduction <add>, %262, %cst_115 [1] : vector<16x16xf32> to vector<16xf32>
    %264 = vector.shape_cast %263 : vector<16xf32> to vector<16x1xf32>
    %265 = tpu.reciprocal %264 {approx = true} : vector<16x1xf32> -> vector<16x1xf32>
    %266 = vector.broadcast %265 : vector<16x1xf32> to vector<16x16xf32>
    %267 = arith.mulf %262, %266 : vector<16x16xf32>
    %cst_116 = arith.constant dense<0.000000e+00> : vector<16x8xf32>
    %268 = tpu.matmul %267, %253, %cst_116 {dimension_numbers = #tpu.dot_dimension_numbers<[1], [0], [0], [1], [0, 0, 1, 1], [], []>} : vector<16x16xf32>, vector<16x8xf32>, vector<16x8xf32> -> vector<16x8xf32>
    %269 = vector.extract_strided_slice %205 {offsets = [16, 0], sizes = [8, 32], strides = [1, 1]} : vector<32x32xf32> to vector<8x32xf32>
    %cst_117 = arith.constant dense<0.000000e+00> : vector<16x32xf32>
    %270 = tpu.matmul %268, %269, %cst_117 {dimension_numbers = #tpu.dot_dimension_numbers<[1], [0], [0], [1], [0, 0, 1, 1], [], []>} : vector<16x8xf32>, vector<8x32xf32>, vector<16x32xf32> -> vector<16x32xf32>
    %271 = arith.addf %250, %270 : vector<16x32xf32>
    %272 = vector.extract_strided_slice %203 {offsets = [0, 24], sizes = [16, 8], strides = [1, 1]} : vector<16x96xf32> to vector<16x8xf32>
    %273 = vector.extract_strided_slice %203 {offsets = [0, 56], sizes = [16, 8], strides = [1, 1]} : vector<16x96xf32> to vector<16x8xf32>
    %274 = vector.extract_strided_slice %203 {offsets = [0, 88], sizes = [16, 8], strides = [1, 1]} : vector<16x96xf32> to vector<16x8xf32>
    %cst_118 = arith.constant dense<0.000000e+00> : vector<16x16xf32>
    %275 = tpu.matmul %272, %273, %cst_118 {dimension_numbers = #tpu.dot_dimension_numbers<[1], [1], [0], [0], [0, 0, 1, 0], [], []>} : vector<16x8xf32>, vector<16x8xf32>, vector<16x16xf32> -> vector<16x16xf32>
    %cst_119 = arith.constant 0.353553385 : f32
    %276 = vector.broadcast %cst_119 : f32 to vector<16x16xf32>
    %277 = arith.mulf %275, %276 : vector<16x16xf32>
    %278 = arith.addf %277, %0 : vector<16x16xf32>
    %cst_120 = arith.constant dense<0xFF800000> : vector<16xf32>
    %279 = vector.multi_reduction <maximumf>, %278, %cst_120 [1] : vector<16x16xf32> to vector<16xf32>
    %280 = vector.shape_cast %279 : vector<16xf32> to vector<16x1xf32>
    %281 = vector.broadcast %280 : vector<16x1xf32> to vector<16x16xf32>
    %282 = arith.subf %278, %281 : vector<16x16xf32>
    %283 = math.exp %282 : vector<16x16xf32>
    %cst_121 = arith.constant dense<0.000000e+00> : vector<16xf32>
    %284 = vector.multi_reduction <add>, %283, %cst_121 [1] : vector<16x16xf32> to vector<16xf32>
    %285 = vector.shape_cast %284 : vector<16xf32> to vector<16x1xf32>
    %286 = tpu.reciprocal %285 {approx = true} : vector<16x1xf32> -> vector<16x1xf32>
    %287 = vector.broadcast %286 : vector<16x1xf32> to vector<16x16xf32>
    %288 = arith.mulf %283, %287 : vector<16x16xf32>
    %cst_122 = arith.constant dense<0.000000e+00> : vector<16x8xf32>
    %289 = tpu.matmul %288, %274, %cst_122 {dimension_numbers = #tpu.dot_dimension_numbers<[1], [0], [0], [1], [0, 0, 1, 1], [], []>} : vector<16x16xf32>, vector<16x8xf32>, vector<16x8xf32> -> vector<16x8xf32>
    %290 = vector.extract_strided_slice %205 {offsets = [24, 0], sizes = [8, 32], strides = [1, 1]} : vector<32x32xf32> to vector<8x32xf32>
    %cst_123 = arith.constant dense<0.000000e+00> : vector<16x32xf32>
    %291 = tpu.matmul %289, %290, %cst_123 {dimension_numbers = #tpu.dot_dimension_numbers<[1], [0], [0], [1], [0, 0, 1, 1], [], []>} : vector<16x8xf32>, vector<8x32xf32>, vector<16x32xf32> -> vector<16x32xf32>
    %292 = arith.addf %271, %291 : vector<16x32xf32>
    %293 = arith.addf %196, %292 : vector<16x32xf32>
    %c1_124 = arith.constant 1 : index
    %c0_125 = arith.constant 0 : index
    %c0_126 = arith.constant 0 : index
    %294 = vector.load %arg9[%c1_124, %c0_125, %c0_126] : memref<2x1x32xf32, #tpu.memory_space<vmem>>, vector<1x1x32xf32>
    %295 = vector.shape_cast %294 : vector<1x1x32xf32> to vector<1x32xf32>
    %c1_127 = arith.constant 1 : index
    %c0_128 = arith.constant 0 : index
    %c0_129 = arith.constant 0 : index
    %296 = vector.load %arg10[%c1_127, %c0_128, %c0_129] : memref<2x1x32xf32, #tpu.memory_space<vmem>>, vector<1x1x32xf32>
    %297 = vector.shape_cast %296 : vector<1x1x32xf32> to vector<1x32xf32>
    %cst_130 = arith.constant dense<0.000000e+00> : vector<16xf32>
    %298 = vector.multi_reduction <add>, %293, %cst_130 [1] : vector<16x32xf32> to vector<16xf32>
    %299 = vector.shape_cast %298 : vector<16xf32> to vector<16x1xf32>
    %cst_131 = arith.constant 3.200000e+01 : f32
    %300 = vector.broadcast %cst_131 : f32 to vector<16x1xf32>
    %301 = arith.divf %299, %300 : vector<16x1xf32>
    %302 = vector.broadcast %301 : vector<16x1xf32> to vector<16x32xf32>
    %303 = arith.subf %293, %302 : vector<16x32xf32>
    %304 = arith.mulf %303, %303 : vector<16x32xf32>
    %cst_132 = arith.constant dense<0.000000e+00> : vector<16xf32>
    %305 = vector.multi_reduction <add>, %304, %cst_132 [1] : vector<16x32xf32> to vector<16xf32>
    %306 = vector.shape_cast %305 : vector<16xf32> to vector<16x1xf32>
    %cst_133 = arith.constant 3.200000e+01 : f32
    %307 = vector.broadcast %cst_133 : f32 to vector<16x1xf32>
    %308 = arith.divf %306, %307 : vector<16x1xf32>
    %cst_134 = arith.constant 9.99999996E-13 : f32
    %309 = vector.broadcast %cst_134 : f32 to vector<16x1xf32>
    %310 = arith.addf %308, %309 : vector<16x1xf32>
    %311 = math.rsqrt %310 : vector<16x1xf32>
    %312 = vector.broadcast %311 : vector<16x1xf32> to vector<16x32xf32>
    %313 = arith.mulf %303, %312 : vector<16x32xf32>
    %314 = vector.broadcast %295 : vector<1x32xf32> to vector<16x32xf32>
    %315 = arith.mulf %313, %314 : vector<16x32xf32>
    %316 = vector.broadcast %297 : vector<1x32xf32> to vector<16x32xf32>
    %317 = arith.addf %315, %316 : vector<16x32xf32>
    %c1_135 = arith.constant 1 : index
    %c0_136 = arith.constant 0 : index
    %c0_137 = arith.constant 0 : index
    %318 = vector.load %arg11[%c1_135, %c0_136, %c0_137] : memref<2x32x64xf32, #tpu.memory_space<vmem>>, vector<1x32x64xf32>
    %319 = vector.shape_cast %318 : vector<1x32x64xf32> to vector<32x64xf32>
    %cst_138 = arith.constant dense<0.000000e+00> : vector<16x64xf32>
    %320 = tpu.matmul %317, %319, %cst_138 {dimension_numbers = #tpu.dot_dimension_numbers<[1], [0], [0], [1], [0, 0, 1, 1], [], []>} : vector<16x32xf32>, vector<32x64xf32>, vector<16x64xf32> -> vector<16x64xf32>
    %c1_139 = arith.constant 1 : index
    %c0_140 = arith.constant 0 : index
    %c0_141 = arith.constant 0 : index
    %321 = vector.load %arg12[%c1_139, %c0_140, %c0_141] : memref<2x1x64xf32, #tpu.memory_space<vmem>>, vector<1x1x64xf32>
    %322 = vector.shape_cast %321 : vector<1x1x64xf32> to vector<1x64xf32>
    %323 = vector.broadcast %322 : vector<1x64xf32> to vector<16x64xf32>
    %324 = arith.addf %320, %323 : vector<16x64xf32>
    %cst_142 = arith.constant 5.000000e-01 : f32
    %325 = vector.broadcast %cst_142 : f32 to vector<16x64xf32>
    %326 = arith.mulf %325, %324 : vector<16x64xf32>
    %cst_143 = arith.constant 4.471500e-02 : f32
    %327 = vector.broadcast %cst_143 : f32 to vector<16x64xf32>
    %328 = arith.mulf %327, %324 : vector<16x64xf32>
    %329 = arith.mulf %328, %324 : vector<16x64xf32>
    %330 = arith.mulf %329, %324 : vector<16x64xf32>
    %331 = arith.addf %324, %330 : vector<16x64xf32>
    %cst_144 = arith.constant 0.797884583 : f32
    %332 = vector.broadcast %cst_144 : f32 to vector<16x64xf32>
    %333 = arith.mulf %332, %331 : vector<16x64xf32>
    %334 = math.tanh %333 : vector<16x64xf32>
    %cst_145 = arith.constant 1.000000e+00 : f32
    %335 = vector.broadcast %cst_145 : f32 to vector<16x64xf32>
    %336 = arith.addf %335, %334 : vector<16x64xf32>
    %337 = arith.mulf %326, %336 : vector<16x64xf32>
    %c1_146 = arith.constant 1 : index
    %c0_147 = arith.constant 0 : index
    %c0_148 = arith.constant 0 : index
    %338 = vector.load %arg13[%c1_146, %c0_147, %c0_148] : memref<2x64x32xf32, #tpu.memory_space<vmem>>, vector<1x64x32xf32>
    %339 = vector.shape_cast %338 : vector<1x64x32xf32> to vector<64x32xf32>
    %cst_149 = arith.constant dense<0.000000e+00> : vector<16x32xf32>
    %340 = tpu.matmul %337, %339, %cst_149 {dimension_numbers = #tpu.dot_dimension_numbers<[1], [0], [0], [1], [0, 0, 1, 1], [], []>} : vector<16x64xf32>, vector<64x32xf32>, vector<16x32xf32> -> vector<16x32xf32>
    %c1_150 = arith.constant 1 : index
    %c0_151 = arith.constant 0 : index
    %c0_152 = arith.constant 0 : index
    %341 = vector.load %arg14[%c1_150, %c0_151, %c0_152] : memref<2x1x32xf32, #tpu.memory_space<vmem>>, vector<1x1x32xf32>
    %342 = vector.shape_cast %341 : vector<1x1x32xf32> to vector<1x32xf32>
    %343 = vector.broadcast %342 : vector<1x32xf32> to vector<16x32xf32>
    %344 = arith.addf %340, %343 : vector<16x32xf32>
    %345 = arith.addf %317, %344 : vector<16x32xf32>
    %c1_153 = arith.constant 1 : index
    %c0_154 = arith.constant 0 : index
    %c0_155 = arith.constant 0 : index
    %346 = vector.load %arg15[%c1_153, %c0_154, %c0_155] : memref<2x1x32xf32, #tpu.memory_space<vmem>>, vector<1x1x32xf32>
    %347 = vector.shape_cast %346 : vector<1x1x32xf32> to vector<1x32xf32>
    %c1_156 = arith.constant 1 : index
    %c0_157 = arith.constant 0 : index
    %c0_158 = arith.constant 0 : index
    %348 = vector.load %arg16[%c1_156, %c0_157, %c0_158] : memref<2x1x32xf32, #tpu.memory_space<vmem>>, vector<1x1x32xf32>
    %349 = vector.shape_cast %348 : vector<1x1x32xf32> to vector<1x32xf32>
    %cst_159 = arith.constant dense<0.000000e+00> : vector<16xf32>
    %350 = vector.multi_reduction <add>, %345, %cst_159 [1] : vector<16x32xf32> to vector<16xf32>
    %351 = vector.shape_cast %350 : vector<16xf32> to vector<16x1xf32>
    %cst_160 = arith.constant 3.200000e+01 : f32
    %352 = vector.broadcast %cst_160 : f32 to vector<16x1xf32>
    %353 = arith.divf %351, %352 : vector<16x1xf32>
    %354 = vector.broadcast %353 : vector<16x1xf32> to vector<16x32xf32>
    %355 = arith.subf %345, %354 : vector<16x32xf32>
    %356 = arith.mulf %355, %355 : vector<16x32xf32>
    %cst_161 = arith.constant dense<0.000000e+00> : vector<16xf32>
    %357 = vector.multi_reduction <add>, %356, %cst_161 [1] : vector<16x32xf32> to vector<16xf32>
    %358 = vector.shape_cast %357 : vector<16xf32> to vector<16x1xf32>
    %cst_162 = arith.constant 3.200000e+01 : f32
    %359 = vector.broadcast %cst_162 : f32 to vector<16x1xf32>
    %360 = arith.divf %358, %359 : vector<16x1xf32>
    %cst_163 = arith.constant 9.99999996E-13 : f32
    %361 = vector.broadcast %cst_163 : f32 to vector<16x1xf32>
    %362 = arith.addf %360, %361 : vector<16x1xf32>
    %363 = math.rsqrt %362 : vector<16x1xf32>
    %364 = vector.broadcast %363 : vector<16x1xf32> to vector<16x32xf32>
    %365 = arith.mulf %355, %364 : vector<16x32xf32>
    %366 = vector.broadcast %347 : vector<1x32xf32> to vector<16x32xf32>
    %367 = arith.mulf %365, %366 : vector<16x32xf32>
    %368 = vector.broadcast %349 : vector<1x32xf32> to vector<16x32xf32>
    %369 = arith.addf %367, %368 : vector<16x32xf32>
    %c0_164 = arith.constant 0 : index
    %c0_165 = arith.constant 0 : index
    %370 = vector.load %arg2[%c0_164, %c0_165] : memref<2x16xf32, #tpu.memory_space<vmem>>, vector<2x16xf32>
    %cst_166 = arith.constant dense<0.000000e+00> : vector<2x32xf32>
    %371 = tpu.matmul %370, %369, %cst_166 {dimension_numbers = #tpu.dot_dimension_numbers<[1], [0], [0], [1], [0, 0, 1, 1], [], []>} : vector<2x16xf32>, vector<16x32xf32>, vector<2x32xf32> -> vector<2x32xf32>
    %c0_167 = arith.constant 0 : index
    %c0_168 = arith.constant 0 : index
    %372 = vector.load %arg17[%c0_167, %c0_168] : memref<32x64xf32, #tpu.memory_space<vmem>>, vector<32x64xf32>
    %cst_169 = arith.constant dense<0.000000e+00> : vector<2x64xf32>
    %373 = tpu.matmul %371, %372, %cst_169 {dimension_numbers = #tpu.dot_dimension_numbers<[1], [0], [0], [1], [0, 0, 1, 1], [], []>} : vector<2x32xf32>, vector<32x64xf32>, vector<2x64xf32> -> vector<2x64xf32>
    %c0_170 = arith.constant 0 : index
    %c0_171 = arith.constant 0 : index
    %374 = vector.load %arg18[%c0_170, %c0_171] : memref<1x64xf32, #tpu.memory_space<vmem>>, vector<1x64xf32>
    %375 = vector.broadcast %374 : vector<1x64xf32> to vector<2x64xf32>
    %376 = arith.addf %373, %375 : vector<2x64xf32>
    %cst_172 = arith.constant 0.000000e+00 : f32
    %377 = vector.broadcast %cst_172 : f32 to vector<2x64xf32>
    %378 = arith.maximumf %376, %377 : vector<2x64xf32>
    %c0_173 = arith.constant 0 : index
    %c0_174 = arith.constant 0 : index
    %379 = vector.load %arg19[%c0_173, %c0_174] : memref<64x2xf32, #tpu.memory_space<vmem>>, vector<64x2xf32>
    %cst_175 = arith.constant dense<0.000000e+00> : vector<2x2xf32>
    %380 = tpu.matmul %378, %379, %cst_175 {dimension_numbers = #tpu.dot_dimension_numbers<[1], [0], [0], [1], [0, 0, 1, 1], [], []>} : vector<2x64xf32>, vector<64x2xf32>, vector<2x2xf32> -> vector<2x2xf32>
    %c0_176 = arith.constant 0 : index
    %c0_177 = arith.constant 0 : index
    %381 = vector.load %arg20[%c0_176, %c0_177] : memref<1x2xf32, #tpu.memory_space<vmem>>, vector<1x2xf32>
    %382 = vector.broadcast %381 : vector<1x2xf32> to vector<2x2xf32>
    %383 = arith.addf %380, %382 : vector<2x2xf32>
    %c0_178 = arith.constant 0 : index
    %c0_179 = arith.constant 0 : index
    %384 = vector.load %arg21[%c0_178, %c0_179] : memref<2x2xf32, #tpu.memory_space<vmem>>, vector<2x2xf32>
    tpu.vector_store %arg21[%c0_178, %c0_179], %383 {strides = array<i32>} : memref<2x2xf32, #tpu.memory_space<vmem>>, vector<2x2xf32>,
    return
  }
}

</mosaic_0001>

<bundles_post_ra>
// kernel: bert_classifier_forward.1
= control target key start
LH: loop header
LB: loop body
LE: loop exit
PB: predicated region body
PF: predicated region fallthrough
CT: control target
= control target key end

     0   :  { %s5064_s0 = inlined_call_operand.vmem [shape: f32[16,32], index: 0, kind: input, shape index: {}]   ;;  %s5065_s1 = inlined_call_operand.vmem [shape: f32[16,16], index: 1, kind: input, shape index: {}]   ;;  %s5066_s2 = inlined_call_operand.vmem [shape: f32[2,16], index: 2, kind: input, shape index: {}]   ;;  %s5067_s3 = inlined_call_operand.vmem [shape: f32[1,32], index: 3, kind: input, shape index: {}]   ;;  %s5068_s4 = inlined_call_operand.vmem [shape: f32[1,32], index: 4, kind: input, shape index: {}]   ;;  %s5069_s5 = inlined_call_operand.vmem [shape: f32[2,32,96], index: 5, kind: input, shape index: {}]   ;;  %s5070_s6 = inlined_call_operand.vmem [shape: f32[2,1,96], index: 6, kind: input, shape index: {}]   ;;  %s5071_s7 = inlined_call_operand.vmem [shape: f32[2,32,32], index: 7, kind: input, shape index: {}]   ;;  %s5072_s8 = inlined_call_operand.vmem [shape: f32[2,1,32], index: 8, kind: input, shape index: {}]   ;;  %s5073_s9 = inlined_call_operand.vmem [shape: f32[2,1,32], index: 9, kind: input, shape index: {}]   ;;  %s5074_s10 = inlined_call_operand.vmem [shape: f32[2,1,32], index: 10, kind: input, shape index: {}]   ;;  %s5075_s11 = inlined_call_operand.vmem [shape: f32[2,32,64], index: 11, kind: input, shape index: {}]   ;;  %s5076_s12 = inlined_call_operand.vmem [shape: f32[2,1,64], index: 12, kind: input, shape index: {}]   ;;  %s5077_s13 = inlined_call_operand.vmem [shape: f32[2,64,32], index: 13, kind: input, shape index: {}]   ;;  %s5078_s14 = inlined_call_operand.vmem [shape: f32[2,1,32], index: 14, kind: input, shape index: {}]   ;;  %s5079_s15 = inlined_call_operand.vmem [shape: f32[2,1,32], index: 15, kind: input, shape index: {}]   ;;  %s5080_s16 = inlined_call_operand.vmem [shape: f32[2,1,32], index: 16, kind: input, shape index: {}]   ;;  %s5081_s17 = inlined_call_operand.vmem [shape: f32[32,64], index: 17, kind: input, shape index: {}]   ;;  %s5082_s18 = inlined_call_operand.vmem [shape: f32[1,64], index: 18, kind: input, shape index: {}]   ;;  %s5083_s19 = inlined_call_operand.vmem [shape: f32[64,2], index: 19, kind: input, shape index: {}]   ;;  %s5084_s20 = inlined_call_operand.vmem [shape: f32[1,2], index: 20, kind: input, shape index: {}]   ;;  %s5085_s21 = inlined_call_operand.hbm [shape: f32[2,2], index: 21, kind: output, shape index: {}]  }
   0x1   :  { %5099 = sst [smem:[#allocation5_spill]] %s5064_s0 }
   0x2   :  { %5100 = sst [smem:[#allocation6_spill]] %s5065_s1 }
   0x3   :  { %5101 = sst [smem:[#allocation7_spill]] %s5066_s2 }
   0x4   :  { %5102 = sst [smem:[#allocation8_spill]] %s5067_s3 }
   0x5   :  { %5103 = sst [smem:[#allocation9_spill]] %s5068_s4 }
   0x6   :  { %5104 = sst [smem:[#allocation10_spill]] %s5069_s5 }
   0x7   :  { %s5105_s26 = sld [smem:[#allocation5_spill]]  ;;  %vm75_vm0 = vcmask 261120  }
   0xd   :  { %v71_v0 = vld [vmem:[%s5105_s26] sm:$0xff]  ;;  %v72_v1 = vld [vmem:[%s5105_s26 + $0x8] sm:$0xff] }
   0xe   :  { %26 = vsyncpa [#allocation3], 0  ;;  %v76_v2 = vsel %vm75_vm0, %v71_v0, 0.0  ;;  %v79_v3 = vsel %vm75_vm0, %v72_v1, 0.0  ;;  %s5106_s0 = sld [smem:[#allocation10_spill]]  ;;  %s5107_s25 = sld [smem:[#allocation8_spill]] }
   0xf   :  { %77 = vadd.xlane.f32.xlu0 %v76_v2  ;;  %s5108_s3 = sld [smem:[#allocation9_spill]]  ;;  %v3493_v36 = vld [vmem:[%s5070_s6] ss:$0 sm:$0xff]  ;;  %vm222_vm1 = vcmask 64512   ;;  %s4432_s4 = smov 96   ;;  %vm310_vm3 = vcmask 130048  }
  0x10   :  { %s4433_s30 = smov 88   ;;  %s4434_s5 = smov 120   ;;  %vm4618_vm2 = vmpackc.low %vm222_vm1, %vm222_vm1  ;;  %vm1541_vm4 = vcmask 523264   ;;  %vm4444_vm5 = vmmov 0   ;;  %vm3475_vm6 = vcmask 9216  }
  0x11   :  { %s5096_s22 = smov 112   ;;  %s5111_s24 = sld [smem:[#allocation6_spill]] }
  0x12   :  { %s5092_s26 = smov 64   ;;  %s5098_s27 = smov 80  }
  0x13   :  { %80 = vadd.xlane.f32.xlu0 %v79_v3  ;;  %s5095_s29 = smov 72   ;;  %s5093_s23 = smov 104  }
  0x14   :  { %v119_v14 = vld [vmem:[%s5106_s0] sm:$0xff]  ;;  %v120_v15 = vld [vmem:[%s5106_s0 + $0x8] sm:$0xff]  ;;  %v121_v16 = vld [vmem:[%s5106_s0 + $0x10] sm:$0xff]  ;;  %s5091_s1 = smov 56   ;;  %s5089_s28 = smov 40  }
  0x15   :  { %v4038_v17 = vpack.c.bf16 %v120_v15, %v119_v14  ;;  %v122_v18 = vld [vmem:[%s5106_s0 + $0x18] sm:$0xff]  ;;  %v3491_v27 = vld [vmem:[%s5107_s25] ss:$0 sm:$0xff]  ;;  %s5116_s25 = smov 64   ;;  %s5119_s2 = smov 40  }
  0x16   :  { %v4042_v19 = vpack.c.bf16 %v122_v18, %v121_v16  ;;  %v3492_v29 = vld [vmem:[%s5108_s3] ss:$0 sm:$0xff]  ;;  %s5090_s3 = smov 48  }
  0x17   :  { %4039 = vmatprep.subr.bf16.mxu0 %v4038_v17  ;;  %v4631_v49 = vld [vmem:[%s5111_s24] sm:$0xff]  ;;  %v4636_v52 = vld [vmem:[%s5111_s24 + $0x8] sm:$0xff] }
  0x18   :  { %4041 = vmatpush3.bf16.msra.mxu0 %v4038_v17 }
  0x19   :  { %4043 = vmatprep.subr.bf16.mxu0 %v4042_v19 }
  0x1c   :  { %4045 = vmatpush3.bf16.msra.mxu0 %v4042_v19 }
  0x9c   :  { %v78_v4 = vpop.xlane.xlu0 %77 }
  0x9d   :  { %v83_v5 = vmul.f32 0.03125, %v78_v4 }
  0x9f   :  { %v85_v6 = vsub.f32 %v71_v0, %v83_v5 }
  0xa0   :  { %v81_v7 = vpop.xlane.xlu0 %80 }
  0xa1   :  { %v84_v8 = vmul.f32 0.03125, %v81_v7  ;;  %v87_v9 = vmul.f32 %v85_v6, %v85_v6 }
  0xa3   :  { %v86_v10 = vsub.f32 %v72_v1, %v84_v8  ;;  %v89_v11 = vsel %vm75_vm0, %v87_v9, 0.0 }
  0xa4   :  { %90 = vadd.xlane.f32.xlu1 %v89_v11 }
  0xa5   :  { %v88_v12 = vmul.f32 %v86_v10, %v86_v10 }
  0xa7   :  { %v92_v13 = vsel %vm75_vm0, %v88_v12, 0.0 }
  0xa8   :  { %93 = vadd.xlane.f32.xlu1 %v92_v13 }
 0x131   :  { %v91_v20 = vpop.xlane.xlu1 %90 }
 0x132   :  { %v95_v21 = vmul.f32 0.03125, %v91_v20 }
 0x134   :  { %v97_v22 = vadd.f32 1e-12, %v95_v21 }
 0x135   :  { %v94_v23 = vpop.xlane.xlu1 %93 }
 0x136   :  { %4314 = vrsqrt.f32 %v97_v22  ;;  %v96_v24 = vmul.f32 0.03125, %v94_v23 }
 0x138   :  { %v98_v25 = vadd.f32 1e-12, %v96_v24 }
 0x13a   :  { %4316 = vrsqrt.f32 %v98_v25  ;;  %v211_v25 = vld [vmem:[%s5071_s7] sm:$0xff] }
 0x13b   :  { %3792 = vmatprep.subr.mxu1 %v211_v25 }
 0x13c   :  { %3793 = vmatpush3.msra.mxu1 %v211_v25 }
 0x140   :  { %v4315_v26 = vpop.eup %4314 }
 0x141   :  { %v101_v28 = vmul.f32 %v4315_v26, %v85_v6 }
 0x143   :  { %v109_v30 = vmul.f32 %v3491_v27, %v101_v28 }
 0x144   :  { %v4317_v31 = vpop.eup %4316 }
 0x145   :  { %v102_v32 = vmul.f32 %v4317_v31, %v86_v10  ;;  %v4585_v33 = vadd.f32 %v3492_v29, %v109_v30 }
 0x147   :  { %v110_v34 = vmul.f32 %v3491_v27, %v102_v32  ;;  %3775 = vmatprep.mubr.msk.f32.mxu0 %vm75_vm0, %v4585_v33 }
 0x149   :  { %v4589_v35 = vadd.f32 %v3492_v29, %v110_v34 }
 0x14b   :  { %3776 = vmatmul.mubr.msk.f32.vlgmr.msra.gmra.mrb[0].mxu0 %vm75_vm0, %v4589_v35 }
 0x21e   :  { %v3777_v37 = vpop.f32.mrb[0].mxu0 }
 0x21f   :  { %v4596_v38 = vadd.f32 %v3777_v37, %v3493_v36  ;;  %v202_v39 = vpop.f32.mrb[1].mxu0 }
 0x220   :  { %v4598_v40 = vadd.f32 %v3493_v36, %v202_v39 }
 0x222   :  { %3782 = vmatprep.mubr.msk.f32.mxu0 %vm222_vm1, %v4598_v40  ;;  %v4604_v41 = vpack.i.bf16 %v4596_v38, %v4598_v40 }
 0x224   :  { %4235 = vrot.lane.b32.xlu0 %v4604_v41, %s4432_s4 }
 0x228   :  { %4245 = vrot.lane.b32.xlu0 %v4604_v41, %s4433_s30 }
 0x22c   :  { %509 = vrot.lane.b32.xlu0 %v4598_v40, %s4434_s5 }
 0x230   :  { %511 = vrot.lane.b32.xlu0 %v4596_v38, %s4434_s5 }
 0x234   :  { %796 = vrot.lane.b32.xlu0 %v4598_v40, %s5096_s22 }
 0x296   :  { %v4236_v42 = vpop.permute.xlu0 %4235 }
 0x297   :  { %v4238_v43 = vunpack.i.h.bf16 %v4236_v42  ;;  %v4237_v44 = vunpack.i.l.bf16 %v4236_v42 }
 0x299   :  { %v4046_v46 = vpack.c.bf16 %v4238_v43, %v4237_v44 }
 0x29a   :  { %v4246_v5 = vpop.permute.xlu0 %4245 }
 0x29b   :  { %4048 = vmatprep.subr.msk.bf16.mxu0 %vm4618_vm2, %v4046_v46  ;;  %v4248_v7 = vunpack.i.h.bf16 %v4246_v5  ;;  %v4247_v8 = vunpack.i.l.bf16 %v4246_v5 }
 0x29c   :  { %4051 = vmatpush3.bf16.xpose.msk.msra.mxu0 %vm4618_vm2, %v4046_v46 }
 0x29d   :  { %v4056_v12 = vpack.c.bf16 %v4248_v7, %v4247_v8 }
 0x29e   :  { %v510_v18 = vpop.permute.xlu0 %509 }
 0x2a2   :  { %v512_v22 = vpop.permute.xlu0 %511 }
 0x2a3   :  { %3783 = vmatmul.mubr.msk.f32.vlgmr.msra.gmra.mrb[2].mxu0 %vm222_vm1, %v4596_v38 }
 0x2a6   :  { %v797_v23 = vpop.permute.xlu0 %796 }
 0x376   :  { %v3784_v47 = vpop.f32.mrb[2].mxu0 }
 0x377   :  { %v297_v48 = vpop.f32.mrb[3].mxu0  ;;  %v307_v50 = vmul.f32 0.35355338, %v3784_v47 }
 0x378   :  { %v306_v51 = vmul.f32 0.35355338, %v297_v48 }
 0x379   :  { %v309_v55 = vadd.f32 %v307_v50, %v4636_v52 }
 0x37a   :  { %v308_v53 = vadd.f32 %v306_v51, %v4631_v49 }
 0x37b   :  { %v314_v56 = vsel %vm310_vm3, %v309_v55, -inf }
 0x37c   :  { %v311_v54 = vsel %vm310_vm3, %v308_v53, -inf }
 0x37d   :  { %312 = vmax.xlane.f32.xlu1 %v311_v54 }
 0x381   :  { %315 = vmax.xlane.f32.xlu1 %v314_v56 }
 0x40a   :  { %v313_v57 = vpop.xlane.xlu1 %312 }
 0x40b   :  { %v317_v58 = vsub.f32 %v308_v53, %v313_v57 }
 0x40d   :  { %v319_v61 = vmul.f32 1.442695, %v317_v58 }
 0x40e   :  { %v316_v59 = vpop.xlane.xlu1 %315 }
 0x40f   :  { %v318_v60 = vsub.f32 %v309_v55, %v316_v59 }
 0x411   :  { %v321_v62 = vmul.f32 1.442695, %v318_v60 }
 0x413   :  { %4318 = vpow2.f32 %v321_v62 }
 0x414   :  { %4320 = vpow2.f32 %v319_v61 }
 0x41d   :  { %v4319_v63 = vpop.eup %4318 }
 0x41e   :  { %v326_v0 = vsel %vm310_vm3, %v4319_v63, 0.0  ;;  %v4321_v1 = vpop.eup %4320 }
 0x41f   :  { %327 = vadd.xlane.f32.xlu1 %v326_v0  ;;  %v323_v2 = vsel %vm310_vm3, %v4321_v1, 0.0 }
 0x423   :  { %324 = vadd.xlane.f32.xlu1 %v323_v2 }
 0x434   :  { %4240 = vrot.lane.b32.xlu1 %v4604_v41, %s5092_s26  ;;  %s5117_s26 = smov 56  }
 0x438   :  { %4250 = vrot.lane.b32.xlu1 %v4604_v41, %s5098_s27 }
 0x43c   :  { %798 = vrot.lane.b32.xlu1 %v4596_v38, %s5096_s22 }
 0x4ac   :  { %v328_v3 = vpop.xlane.xlu1 %327 }
 0x4ad   :  { %4322 = vrcp.f32 %v328_v3 }
 0x4b0   :  { %v325_v4 = vpop.xlane.xlu1 %324 }
 0x4b1   :  { %4324 = vrcp.f32 %v325_v4 }
 0x4b4   :  { %v4241_v6 = vpop.permute.xlu1 %4240 }
 0x4b5   :  { %v4243_v9 = vunpack.i.h.bf16 %v4241_v6  ;;  %v4242_v10 = vunpack.i.l.bf16 %v4241_v6 }
 0x4b7   :  { %v4052_v11 = vpack.c.bf16 %v4243_v9, %v4242_v10  ;;  %v4323_v13 = vpop.eup %4322 }
 0x4b8   :  { %v4251_v15 = vpop.permute.xlu1 %4250  ;;  %v332_v17 = vmul.f32 %v4323_v13, %v4319_v63 }
 0x4b9   :  { %4053 = vmatprep.subr.bf16.mxu0 %v4052_v11  ;;  %v4253_v19 = vunpack.i.h.bf16 %v4251_v15  ;;  %v4252_v20 = vunpack.i.l.bf16 %v4251_v15 }
 0x4ba   :  { %4055 = vmatpush3.bf16.msra.mxu0 %v4052_v11 }
 0x4bb   :  { %v4325_v14 = vpop.eup %4324  ;;  %4058 = vmatprep.subr.msk.bf16.mxu0 %vm4618_vm2, %v4056_v12  ;;  %v4066_v21 = vpack.c.bf16 %v4253_v19, %v4252_v20 }
 0x4bc   :  { %v331_v16 = vmul.f32 %v4325_v14, %v4321_v1  ;;  %v799_v24 = vpop.permute.xlu1 %798 }
 0x4be   :  { %3789 = vmatprep.mubr.msk.f32.mxu0 %vm310_vm3, %v331_v16 }
 0x4bf   :  { %3790 = vmatmul.mubr.msk.f32.vlgmr.msra.gmra.mrb[4].mxu0 %vm310_vm3, %v332_v17 }
 0x4c0   :  { %3801 = vmatprep.mubr.msk.f32.mxu0 %vm222_vm1, %v510_v18 }
 0x4c3   :  { %4061 = vmatpush3.bf16.xpose.msk.msra.mxu0 %vm4618_vm2, %v4056_v12 }
 0x4c4   :  { %4068 = vmatprep.subr.msk.bf16.mxu0 %vm4618_vm2, %v4066_v21 }
 0x4ca   :  { %3802 = vmatmul.mubr.msk.f32.vlgmr.msra.gmra.mrb[6].mxu0 %vm222_vm1, %v512_v22 }
 0x4cb   :  { %4071 = vmatpush3.bf16.xpose.msk.msra.mxu0 %vm4618_vm2, %v4066_v21  ;;  %3820 = vmatprep.mubr.msk.f32.mxu0 %vm222_vm1, %v797_v23 }
 0x4d2   :  { %3821 = vmatmul.mubr.msk.f32.vlgmr.msra.gmra.mrb[8].mxu0 %vm222_vm1, %v799_v24 }
 0x592   :  { %v3791_v26 = vpop.f32.mrb[4].mxu0 }
 0x593   :  { %v411_v27 = vpop.f32.mrb[5].mxu0 }
 0x594   :  { %3794 = vmatprep.mubr.msk.f32.mxu1 %vm222_vm1, %v411_v27 }
 0x595   :  { %3795 = vmatmul.mubr.msk.f32.vlgmr.msra.gmra.mrb[0].mxu1 %vm222_vm1, %v3791_v26 }
 0x59d   :  { %v3803_v28 = vpop.f32.mrb[6].mxu0 }
 0x59e   :  { %v601_v29 = vmul.f32 0.35355338, %v3803_v28  ;;  %v591_v30 = vpop.f32.mrb[7].mxu0 }
 0x59f   :  { %v600_v31 = vmul.f32 0.35355338, %v591_v30  ;;  %v212_v30 = vld [vmem:[%s5071_s7 + $0x8] sm:$0xff] }
 0x5a0   :  { %v603_v32 = vadd.f32 %v601_v29, %v4636_v52 }
 0x5a1   :  { %v602_v34 = vadd.f32 %v600_v31, %v4631_v49 }
 0x5a2   :  { %v607_v36 = vsel %vm310_vm3, %v603_v32, -inf }
 0x5a3   :  { %608 = vmax.xlane.f32.xlu1 %v607_v36  ;;  %v604_v37 = vsel %vm310_vm3, %v602_v34, -inf }
 0x5a4   :  { %605 = vmax.xlane.f32.xlu0 %v604_v37 }
 0x5a5   :  { %v3822_v39 = vpop.f32.mrb[8].mxu0 }
 0x5a6   :  { %v878_v42 = vpop.f32.mrb[9].mxu0  ;;  %v888_v43 = vmul.f32 0.35355338, %v3822_v39 }
 0x5a7   :  { %v887_v2 = vmul.f32 0.35355338, %v878_v42 }
 0x5a8   :  { %v890_v44 = vadd.f32 %v888_v43, %v4636_v52 }
 0x5a9   :  { %v889_v3 = vadd.f32 %v887_v2, %v4631_v49 }
 0x5aa   :  { %v894_v46 = vsel %vm310_vm3, %v890_v44, -inf }
 0x5ab   :  { %v891_v4 = vsel %vm310_vm3, %v889_v3, -inf }
 0x5b4   :  { %4260 = vrot.lane.b32.xlu1 %v4604_v41, %s5095_s29 }
 0x5b8   :  { %1083 = vrot.lane.b32.xlu1 %v4598_v40, %s5093_s23 }
 0x5bc   :  { %1085 = vrot.lane.b32.xlu1 %v4596_v38, %s5093_s23 }
 0x5e0   :  { %895 = vmax.xlane.f32.xlu1 %v894_v46 }
 0x630   :  { %v609_v47 = vpop.xlane.xlu1 %608 }
 0x631   :  { %v611_v48 = vsub.f32 %v603_v32, %v609_v47  ;;  %v606_v50 = vpop.xlane.xlu0 %605 }
 0x632   :  { %v610_v51 = vsub.f32 %v602_v34, %v606_v50 }
 0x633   :  { %v614_v53 = vmul.f32 1.442695, %v611_v48 }
 0x634   :  { %v612_v54 = vmul.f32 1.442695, %v610_v51  ;;  %v4261_v55 = vpop.permute.xlu1 %4260 }
 0x635   :  { %4326 = vpow2.f32 %v614_v53  ;;  %v4263_v56 = vunpack.i.h.bf16 %v4261_v55  ;;  %v4262_v57 = vunpack.i.l.bf16 %v4261_v55 }
 0x636   :  { %4328 = vpow2.f32 %v612_v54 }
 0x637   :  { %v4076_v40 = vpack.c.bf16 %v4263_v56, %v4262_v57 }
 0x638   :  { %v1084_v58 = vpop.permute.xlu1 %1083 }
 0x639   :  { %4078 = vmatprep.subr.msk.bf16.mxu0 %vm4618_vm2, %v4076_v40  ;;  %3839 = vmatprep.mubr.msk.f32.mxu0 %vm222_vm1, %v1084_v58 }
 0x63a   :  { %4081 = vmatpush3.bf16.xpose.msk.msra.mxu0 %vm4618_vm2, %v4076_v40 }
 0x63c   :  { %v1086_v59 = vpop.permute.xlu1 %1085 }
 0x63f   :  { %v4327_v38 = vpop.eup %4326 }
 0x640   :  { %v619_v60 = vsel %vm310_vm3, %v4327_v38, 0.0  ;;  %v4329_v61 = vpop.eup %4328 }
 0x641   :  { %3840 = vmatmul.mubr.msk.f32.vlgmr.msra.gmra.mrb[10].mxu0 %vm222_vm1, %v1086_v59  ;;  %620 = vadd.xlane.f32.xlu0 %v619_v60  ;;  %v616_v62 = vsel %vm310_vm3, %v4329_v61, 0.0  ;;  %v213_v59 = vld [vmem:[%s5071_s7 + $0x10] sm:$0xff] }
 0x645   :  { %617 = vadd.xlane.f32.xlu0 %v616_v62 }
 0x65b   :  { %4255 = vrot.lane.b32.xlu0 %v4604_v41, %s5091_s1 }
 0x66d   :  { %v896_v63 = vpop.xlane.xlu1 %895 }
 0x66e   :  { %v898_v0 = vsub.f32 %v890_v44, %v896_v63 }
 0x670   :  { %v901_v1 = vmul.f32 1.442695, %v898_v0 }
 0x672   :  { %4330 = vpow2.f32 %v901_v1 }
 0x67a   :  { %892 = vmax.xlane.f32.xlu0 %v891_v4 }
 0x67c   :  { %v4693_v5 = vpop.eup %4330 }
 0x67d   :  { %v906_v6 = vsel %vm310_vm3, %v4693_v5, 0.0 }
 0x67e   :  { %907 = vadd.xlane.f32.xlu0 %v906_v6  ;;  %v214_v6 = vld [vmem:[%s5071_s7 + $0x18] sm:$0xff] }
 0x6ce   :  { %v621_v7 = vpop.xlane.xlu0 %620 }
 0x6cf   :  { %4332 = vrcp.f32 %v621_v7 }
 0x6d2   :  { %v618_v8 = vpop.xlane.xlu0 %617 }
 0x6d3   :  { %4334 = vrcp.f32 %v618_v8 }
 0x6d6   :  { %v4256_v9 = vpop.permute.xlu0 %4255 }
 0x6d7   :  { %v4258_v10 = vunpack.i.h.bf16 %v4256_v9  ;;  %v4257_v11 = vunpack.i.l.bf16 %v4256_v9 }
 0x6d9   :  { %v4062_v12 = vpack.c.bf16 %v4258_v10, %v4257_v11  ;;  %v4333_v13 = vpop.eup %4332  ;;  %v3504_v10 = vld [vmem:[%s5072_s8] ss:$0 sm:$0xff] }
 0x6da   :  { %v625_v16 = vmul.f32 %v4333_v13, %v4327_v38 }
 0x6db   :  { %4063 = vmatprep.subr.bf16.mxu1 %v4062_v12 }
 0x6dc   :  { %4065 = vmatpush3.bf16.msra.mxu1 %v4062_v12 }
 0x6dd   :  { %v4335_v14 = vpop.eup %4334  ;;  %3811 = vmatprep.subr.mxu1 %v212_v30 }
 0x6de   :  { %v624_v15 = vmul.f32 %v4335_v14, %v4329_v61 }
 0x6e0   :  { %3808 = vmatprep.mubr.msk.f32.mxu1 %vm310_vm3, %v624_v15 }
 0x6e1   :  { %3809 = vmatmul.mubr.msk.f32.vlgmr.msra.gmra.mrb[2].mxu1 %vm310_vm3, %v625_v16 }
 0x6e2   :  { %3812 = vmatpush3.msra.mxu1 %v212_v30  ;;  %v1418_v30 = vld [vmem:[%s5075_s11 + $0x10] sm:$0xff] }
 0x707   :  { %v893_v17 = vpop.xlane.xlu0 %892 }
 0x708   :  { %v897_v18 = vsub.f32 %v889_v3, %v893_v17 }
 0x70a   :  { %v899_v19 = vmul.f32 1.442695, %v897_v18 }
 0x70b   :  { %v908_v31 = vpop.xlane.xlu0 %907 }
 0x70c   :  { %4336 = vpow2.f32 %v899_v19 }
 0x714   :  { %v3841_v20 = vpop.f32.mrb[10].mxu0 }
 0x715   :  { %v1165_v21 = vpop.f32.mrb[11].mxu0  ;;  %v1175_v23 = vmul.f32 0.35355338, %v3841_v20 }
 0x716   :  { %v4337_v22 = vpop.eup %4336  ;;  %v1174_v24 = vmul.f32 0.35355338, %v1165_v21 }
 0x717   :  { %v903_v25 = vsel %vm310_vm3, %v4337_v22, 0.0  ;;  %v1177_v28 = vadd.f32 %v1175_v23, %v4636_v52 }
 0x718   :  { %904 = vadd.xlane.f32.xlu0 %v903_v25  ;;  %v1176_v26 = vadd.f32 %v1174_v24, %v4631_v49 }
 0x719   :  { %v1181_v29 = vsel %vm310_vm3, %v1177_v28, -inf }
 0x71a   :  { %v1178_v27 = vsel %vm310_vm3, %v1176_v26, -inf }
 0x71b   :  { %1179 = vmax.xlane.f32.xlu1 %v1178_v27 }
 0x71f   :  { %1182 = vmax.xlane.f32.xlu1 %v1181_v29 }
 0x72e   :  { %4265 = vrot.lane.b32.xlu0 %v4604_v41, %s5090_s3 }
 0x7a5   :  { %v905_v32 = vpop.xlane.xlu0 %904 }
 0x7a6   :  { %4338 = vrcp.f32 %v905_v32 }
 0x7a7   :  { %4340 = vrcp.f32 %v908_v31  ;;  %v1419_v31 = vld [vmem:[%s5075_s11 + $0x18] sm:$0xff] }
 0x7a8   :  { %v1180_v34 = vpop.xlane.xlu1 %1179  ;;  %v4090_v32 = vpack.c.bf16 %v1419_v31, %v1418_v30 }
 0x7a9   :  { %v4266_v36 = vpop.permute.xlu0 %4265  ;;  %v1184_v42 = vsub.f32 %v1176_v26, %v1180_v34 }
 0x7aa   :  { %v4268_v37 = vunpack.i.h.bf16 %v4266_v36  ;;  %v4267_v39 = vunpack.i.l.bf16 %v4266_v36 }
 0x7ab   :  { %v1186_v47 = vmul.f32 1.442695, %v1184_v42 }
 0x7ac   :  { %v4072_v43 = vpack.c.bf16 %v4268_v37, %v4267_v39  ;;  %v1183_v44 = vpop.xlane.xlu1 %1182 }
 0x7ad   :  { %v1185_v46 = vsub.f32 %v1177_v28, %v1183_v44  ;;  %v1417_v28 = vld [vmem:[%s5075_s11 + $0x8] sm:$0xff] }
 0x7ae   :  { %4073 = vmatprep.subr.bf16.mxu1 %v4072_v43 }
 0x7af   :  { %v1188_v48 = vmul.f32 1.442695, %v1185_v46  ;;  %v3529_v46 = vld [vmem:[%s5073_s9] ss:$0 sm:$0xff] }
 0x7b0   :  { %v4339_v50 = vpop.eup %4338 }
 0x7b1   :  { %4342 = vpow2.f32 %v1188_v48  ;;  %v4341_v54 = vpop.eup %4340  ;;  %v911_v55 = vmul.f32 %v4339_v50, %v4337_v22  ;;  %v3530_v48 = vld [vmem:[%s5074_s10] ss:$0 sm:$0xff] }
 0x7b2   :  { %4344 = vpow2.f32 %v1186_v47  ;;  %v912_v56 = vmul.f32 %v4341_v54, %v4693_v5 }
 0x7b4   :  { %v3810_v51 = vpop.f32.mrb[2].mxu1 }
 0x7b5   :  { %v704_v53 = vpop.f32.mrb[3].mxu1 }
 0x7b6   :  { %3813 = vmatprep.mubr.msk.f32.mxu1 %vm222_vm1, %v704_v53 }
 0x7b7   :  { %3814 = vmatmul.mubr.msk.f32.vlgmr.msra.gmra.mrb[0].mxu1 %vm222_vm1, %v3810_v51 }
 0x7b8   :  { %4075 = vmatpush3.bf16.msra.mxu1 %v4072_v43  ;;  %3827 = vmatprep.mubr.msk.f32.mxu1 %vm310_vm3, %v911_v55 }
 0x7b9   :  { %3830 = vmatprep.subr.mxu1 %v213_v59 }
 0x7bb   :  { %v4343_v57 = vpop.eup %4342  ;;  %3828 = vmatmul.mubr.msk.f32.vlgmr.msra.gmra.mrb[4].mxu1 %vm310_vm3, %v912_v56 }
 0x7bc   :  { %v1193_v40 = vsel %vm310_vm3, %v4343_v57, 0.0  ;;  %v4345_v58 = vpop.eup %4344  ;;  %3831 = vmatpush3.msra.mxu1 %v213_v59  ;;  %v1529_v59 = vld [vmem:[%s5077_s13 + $0x18] sm:$0xff] }
 0x7bd   :  { %1194 = vadd.xlane.f32.xlu1 %v1193_v40  ;;  %v1190_v38 = vsel %vm310_vm3, %v4345_v58, 0.0  ;;  %v1527_v40 = vld [vmem:[%s5077_s13 + $0x8] sm:$0xff] }
 0x7c1   :  { %1191 = vadd.xlane.f32.xlu1 %v1190_v38  ;;  %v1528_v38 = vld [vmem:[%s5077_s13 + $0x10] sm:$0xff] }
 0x7d2   :  { %4270 = vrot.lane.b32.xlu1 %v4604_v41, %s5089_s28 }
 0x84a   :  { %v1195_v60 = vpop.xlane.xlu1 %1194 }
 0x84e   :  { %v1192_v61 = vpop.xlane.xlu1 %1191 }
 0x84f   :  { %4346 = vrcp.f32 %v1192_v61  ;;  %v1530_v61 = vld [vmem:[%s5077_s13 + $0x20] sm:$0xff] }
 0x850   :  { %4348 = vrcp.f32 %v1195_v60  ;;  %v4098_v60 = vpack.c.bf16 %v1529_v59, %v1528_v38 }
 0x852   :  { %v4271_v62 = vpop.permute.xlu1 %4270 }
 0x853   :  { %v4273_v63 = vunpack.i.h.bf16 %v4271_v62  ;;  %v4272_v0 = vunpack.i.l.bf16 %v4271_v62  ;;  %v1531_v62 = vld [vmem:[%s5077_s13 + $0x28] sm:$0xff] }
 0x855   :  { %v4082_v1 = vpack.c.bf16 %v4273_v63, %v4272_v0  ;;  %v4102_v63 = vpack.c.bf16 %v1531_v62, %v1530_v61  ;;  %v1532_v0 = vld [vmem:[%s5077_s13 + $0x30] sm:$0xff]  ;;  %v3537_v61 = vld [vmem:[%s5079_s15] ss:$0 sm:$0xff] }
 0x857   :  { %4083 = vmatprep.subr.bf16.mxu1 %v4082_v1 }
 0x859   :  { %v4347_v2 = vpop.eup %4346 }
 0x85a   :  { %v4349_v5 = vpop.eup %4348  ;;  %v1198_v41 = vmul.f32 %v4347_v2, %v4345_v58 }
 0x85b   :  { %v1199_v7 = vmul.f32 %v4349_v5, %v4343_v57  ;;  %v1526_v57 = vld [vmem:[%s5077_s13] sm:$0xff] }
 0x85c   :  { %v4094_v58 = vpack.c.bf16 %v1527_v40, %v1526_v57 }
 0x88e   :  { %v3829_v3 = vpop.f32.mrb[4].mxu1 }
 0x88f   :  { %v991_v4 = vpop.f32.mrb[5].mxu1 }
 0x890   :  { %3832 = vmatprep.mubr.msk.f32.mxu1 %vm222_vm1, %v991_v4 }
 0x891   :  { %3833 = vmatmul.mubr.msk.f32.vlgmr.msra.gmra.mrb[0].mxu1 %vm222_vm1, %v3829_v3  ;;  %v3531_v3 = vld [vmem:[%s5076_s12] ss:$0 sm:$0xff] }
 0x892   :  { %4085 = vmatpush3.bf16.msra.mxu1 %v4082_v1  ;;  %3846 = vmatprep.mubr.msk.f32.mxu1 %vm310_vm3, %v1198_v41  ;;  %v1533_v1 = vld [vmem:[%s5077_s13 + $0x38] sm:$0xff] }
 0x893   :  { %3849 = vmatprep.subr.mxu1 %v214_v6  ;;  %v4106_v2 = vpack.c.bf16 %v1533_v1, %v1532_v0 }
 0x895   :  { %3847 = vmatmul.mubr.msk.f32.vlgmr.msra.gmra.mrb[6].mxu1 %vm310_vm3, %v1199_v7 }
 0x896   :  { %3850 = vmatpush3.msra.mxu1 %v214_v6 }
 0x897   :  { %4095 = vmatprep.subr.bf16.mxu1 %v4094_v58 }
 0x968   :  { %v3848_v8 = vpop.f32.mrb[6].mxu1 }
 0x969   :  { %v1278_v9 = vpop.f32.mrb[7].mxu1 }
 0x96a   :  { %3851 = vmatprep.mubr.msk.f32.mxu1 %vm222_vm1, %v1278_v9 }
 0x96b   :  { %3852 = vmatmul.mubr.msk.f32.vlgmr.msra.gmra.mrb[0].mxu1 %vm222_vm1, %v3848_v8 }
 0x96c   :  { %4097 = vmatpush3.bf16.msra.mxu1 %v4094_v58 }
 0x96d   :  { %4099 = vmatprep.subr.bf16.mxu1 %v4098_v60 }
 0x970   :  { %4101 = vmatpush3.bf16.msra.mxu1 %v4098_v60 }
 0x971   :  { %4103 = vmatprep.subr.bf16.mxu1 %v4102_v63 }
 0x974   :  { %4105 = vmatpush3.bf16.msra.mxu1 %v4102_v63  ;;  %v3538_v63 = vld [vmem:[%s5080_s16] ss:$0 sm:$0xff] }
 0x975   :  { %4107 = vmatprep.subr.bf16.mxu1 %v4106_v2 }
 0x978   :  { %4109 = vmatpush3.bf16.msra.mxu1 %v4106_v2 }
 0xa3e   :  { %v3853_v11 = vpop.f32.mrb[0].mxu1 }
 0xa3f   :  { %v4203_v12 = vadd.f32 %v3853_v11, %v3504_v10  ;;  %v1359_v13 = vpop.f32.mrb[1].mxu1 }
 0xa40   :  { %v4204_v14 = vadd.f32 %v3504_v10, %v1359_v13 }
 0xa41   :  { %v1371_v15 = vadd.f32 %v4203_v12, %v4589_v35 }
 0xa42   :  { %v1370_v16 = vadd.f32 %v4204_v14, %v4585_v33  ;;  %v1416_v33 = vld [vmem:[%s5075_s11] sm:$0xff] }
 0xa43   :  { %v1377_v17 = vsel %vm75_vm0, %v1371_v15, 0.0  ;;  %v4086_v29 = vpack.c.bf16 %v1417_v28, %v1416_v33 }
 0xa44   :  { %1378 = vadd.xlane.f32.xlu1 %v1377_v17  ;;  %v1374_v18 = vsel %vm75_vm0, %v1370_v16, 0.0 }
 0xa45   :  { %1375 = vadd.xlane.f32.xlu0 %v1374_v18  ;;  %4087 = vmatprep.subr.bf16.mxu0 %v4086_v29 }
 0xa46   :  { %4089 = vmatpush3.bf16.msra.mxu0 %v4086_v29 }
 0xa47   :  { %4091 = vmatprep.subr.bf16.mxu0 %v4090_v32 }
 0xa4a   :  { %4093 = vmatpush3.bf16.msra.mxu0 %v4090_v32 }
 0xad1   :  { %v1379_v19 = vpop.xlane.xlu1 %1378 }
 0xad2   :  { %v1381_v20 = vmul.f32 0.03125, %v1379_v19  ;;  %v1376_v21 = vpop.xlane.xlu0 %1375 }
 0xad3   :  { %v1380_v22 = vmul.f32 0.03125, %v1376_v21 }
 0xad4   :  { %v1383_v23 = vsub.f32 %v1371_v15, %v1381_v20 }
 0xad5   :  { %v1382_v24 = vsub.f32 %v1370_v16, %v1380_v22 }
 0xad6   :  { %v1385_v27 = vmul.f32 %v1383_v23, %v1383_v23 }
 0xad7   :  { %v1384_v25 = vmul.f32 %v1382_v24, %v1382_v24 }
 0xad8   :  { %v1389_v35 = vsel %vm75_vm0, %v1385_v27, 0.0 }
 0xad9   :  { %v1386_v26 = vsel %vm75_vm0, %v1384_v25, 0.0  ;;  %v3534_v25 = vld [vmem:[%s5078_s14] ss:$0 sm:$0xff] }
 0xada   :  { %1387 = vadd.xlane.f32.xlu0 %v1386_v26 }
 0xade   :  { %1390 = vadd.xlane.f32.xlu0 %v1389_v35 }
 0xb67   :  { %v1388_v34 = vpop.xlane.xlu0 %1387 }
 0xb68   :  { %v1392_v36 = vmul.f32 0.03125, %v1388_v34 }
 0xb6a   :  { %v1394_v37 = vadd.f32 1e-12, %v1392_v36 }
 0xb6b   :  { %v1391_v39 = vpop.xlane.xlu0 %1390 }
 0xb6c   :  { %4350 = vrsqrt.f32 %v1394_v37  ;;  %v1393_v42 = vmul.f32 0.03125, %v1391_v39 }
 0xb6e   :  { %v1395_v43 = vadd.f32 1e-12, %v1393_v42 }
 0xb70   :  { %4352 = vrsqrt.f32 %v1395_v43 }
 0xb76   :  { %v4351_v44 = vpop.eup %4350 }
 0xb77   :  { %v1398_v47 = vmul.f32 %v4351_v44, %v1382_v24 }
 0xb79   :  { %v1406_v50 = vmul.f32 %v3529_v46, %v1398_v47 }
 0xb7a   :  { %v4353_v51 = vpop.eup %4352 }
 0xb7b   :  { %v1399_v53 = vmul.f32 %v4353_v51, %v1383_v23  ;;  %v1414_v54 = vadd.f32 %v3530_v48, %v1406_v50  ;;  %v3540_v50 = vld [vmem:[%s5106_s0 + $0x28] sm:$0xff] }
 0xb7d   :  { %v1407_v55 = vmul.f32 %v3529_v46, %v1399_v53  ;;  %3862 = vmatprep.mubr.msk.f32.mxu0 %vm75_vm0, %v1414_v54  ;;  %v3541_v53 = vld [vmem:[%s5106_s0 + $0x30] sm:$0xff] }
 0xb7f   :  { %v1415_v56 = vadd.f32 %v3530_v48, %v1407_v55  ;;  %v3539_v48 = vld [vmem:[%s5106_s0 + $0x20] sm:$0xff] }
 0xb80   :  { %v4110_v51 = vpack.c.bf16 %v3540_v50, %v3539_v48 }
 0xb81   :  { %3863 = vmatmul.mubr.msk.f32.vlgmr.msra.gmra.mrb[12].mxu0 %vm75_vm0, %v1415_v56 }
 0xb82   :  { %4111 = vmatprep.subr.bf16.mxu0 %v4110_v51 }
 0xb83   :  { %4113 = vmatpush3.bf16.msra.mxu0 %v4110_v51 }
 0xc54   :  { %v3864_v4 = vpop.f32.mrb[12].mxu0 }
 0xc55   :  { %v1505_v5 = vadd.f32 %v3864_v4, %v3531_v3  ;;  %v1499_v41 = vpop.f32.mrb[13].mxu0 }
 0xc56   :  { %v1500_v6 = vadd.f32 %v3531_v3, %v1499_v41  ;;  %v3544_v41 = vld [vmem:[%s5070_s6 + $0x1] ss:$0 sm:$0xff]  ;;  %s5112_s6 = smov 80  }
 0xc57   :  { %v1511_v7 = vmul.f32 0.044715, %v1505_v5  ;;  %v1509_v22 = vmul.f32 0.5, %v1505_v5 }
 0xc58   :  { %v1510_v8 = vmul.f32 0.044715, %v1500_v6  ;;  %v1508_v20 = vmul.f32 0.5, %v1500_v6 }
 0xc59   :  { %v1513_v9 = vmul.f32 %v1511_v7, %v1505_v5 }
 0xc5a   :  { %v1512_v10 = vmul.f32 %v1510_v8, %v1500_v6 }
 0xc5b   :  { %v1515_v11 = vmul.f32 %v1513_v9, %v1505_v5 }
 0xc5c   :  { %v1514_v12 = vmul.f32 %v1512_v10, %v1500_v6 }
 0xc5d   :  { %v1517_v13 = vadd.f32 %v1515_v11, %v1505_v5 }
 0xc5e   :  { %v1516_v14 = vadd.f32 %v1514_v12, %v1500_v6 }
 0xc5f   :  { %v1519_v15 = vmul.f32 0.7978846, %v1517_v13 }
 0xc60   :  { %v1518_v16 = vmul.f32 0.7978846, %v1516_v14 }
 0xc61   :  { %4354 = vtanh.f32 %v1519_v15 }
 0xc62   :  { %4356 = vtanh.f32 %v1518_v16 }
 0xc6b   :  { %v4355_v17 = vpop.eup %4354 }
 0xc6c   :  { %v4357_v18 = vpop.eup %4356  ;;  %v1523_v19 = vadd.f32 1.0, %v4355_v17 }
 0xc6d   :  { %v1522_v21 = vadd.f32 1.0, %v4357_v18 }
 0xc6e   :  { %v1525_v24 = vmul.f32 %v1523_v19, %v1509_v22 }
 0xc6f   :  { %v1524_v23 = vmul.f32 %v1522_v21, %v1508_v20 }
 0xc71   :  { %3881 = vmatprep.mubr.msk.f32.mxu1 %vm1541_vm4, %v1524_v23 }
 0xc72   :  { %3882 = vmatmul.mubr.msk.f32.vlgmr.msra.gmra.mrb[8].mxu1 %vm1541_vm4, %v1525_v24 }
 0xd45   :  { %v3883_v26 = vpop.f32.mrb[8].mxu1 }
 0xd46   :  { %v1614_v27 = vpop.f32.mrb[9].mxu1  ;;  %v1620_v35 = vadd.f32 %v3883_v26, %v3534_v25 }
 0xd47   :  { %v1615_v33 = vadd.f32 %v3534_v25, %v1614_v27 }
 0xd48   :  { %v1624_v30 = vadd.f32 %v1620_v35, %v1415_v56 }
 0xd49   :  { %v1623_v28 = vadd.f32 %v1615_v33, %v1414_v54  ;;  %v3542_v54 = vld [vmem:[%s5106_s0 + $0x38] sm:$0xff]  ;;  %s5118_s0 = smov 48  }
 0xd4a   :  { %v1630_v31 = vsel %vm75_vm0, %v1624_v30, 0.0  ;;  %v4114_v55 = vpack.c.bf16 %v3542_v54, %v3541_v53 }
 0xd4b   :  { %v1627_v29 = vsel %vm75_vm0, %v1623_v28, 0.0 }
 0xd4c   :  { %1628 = vadd.xlane.f32.xlu0 %v1627_v29  ;;  %4115 = vmatprep.subr.bf16.mxu0 %v4114_v55 }
 0xd4d   :  { %4117 = vmatpush3.bf16.msra.mxu0 %v4114_v55 }
 0xd50   :  { %1631 = vadd.xlane.f32.xlu0 %v1630_v31 }
 0xdd9   :  { %v1629_v32 = vpop.xlane.xlu0 %1628 }
 0xdda   :  { %v1633_v34 = vmul.f32 0.03125, %v1629_v32 }
 0xddc   :  { %v1635_v36 = vsub.f32 %v1623_v28, %v1633_v34 }
 0xddd   :  { %v1632_v37 = vpop.xlane.xlu0 %1631 }
 0xdde   :  { %v1634_v39 = vmul.f32 0.03125, %v1632_v37  ;;  %v1637_v42 = vmul.f32 %v1635_v36, %v1635_v36 }
 0xde0   :  { %v1636_v43 = vsub.f32 %v1624_v30, %v1634_v39  ;;  %v1639_v44 = vsel %vm75_vm0, %v1637_v42, 0.0 }
 0xde1   :  { %1640 = vadd.xlane.f32.xlu0 %v1639_v44 }
 0xde2   :  { %v1638_v46 = vmul.f32 %v1636_v43, %v1636_v43 }
 0xde4   :  { %v1642_v47 = vsel %vm75_vm0, %v1638_v46, 0.0 }
 0xde5   :  { %1643 = vadd.xlane.f32.xlu1 %v1642_v47 }
 0xe6e   :  { %v1641_v56 = vpop.xlane.xlu0 %1640 }
 0xe6f   :  { %v1645_v57 = vmul.f32 0.03125, %v1641_v56 }
 0xe71   :  { %v1647_v40 = vadd.f32 1e-12, %v1645_v57 }
 0xe72   :  { %v1644_v58 = vpop.xlane.xlu1 %1643 }
 0xe73   :  { %4358 = vrsqrt.f32 %v1647_v40  ;;  %v1646_v38 = vmul.f32 0.03125, %v1644_v58 }
 0xe75   :  { %v1648_v59 = vadd.f32 1e-12, %v1646_v38 }
 0xe77   :  { %4360 = vrsqrt.f32 %v1648_v59 }
 0xe7d   :  { %v4359_v60 = vpop.eup %4358 }
 0xe7e   :  { %v1651_v62 = vmul.f32 %v4359_v60, %v1635_v36 }
 0xe80   :  { %v1659_v0 = vmul.f32 %v3537_v61, %v1651_v62 }
 0xe81   :  { %v4361_v1 = vpop.eup %4360 }
 0xe82   :  { %v1652_v2 = vmul.f32 %v4361_v1, %v1636_v43  ;;  %v4813_v3 = vadd.f32 %v3538_v63, %v1659_v0 }
 0xe84   :  { %v1660_v4 = vmul.f32 %v3537_v61, %v1652_v2  ;;  %3892 = vmatprep.mubr.msk.f32.mxu0 %vm75_vm0, %v4813_v3 }
 0xe86   :  { %v4817_v5 = vadd.f32 %v3538_v63, %v1660_v4 }
 0xe88   :  { %3893 = vmatmul.mubr.msk.f32.vlgmr.msra.gmra.mrb[14].mxu0 %vm75_vm0, %v4817_v5 }
 0xf5b   :  { %v3894_v6 = vpop.f32.mrb[14].mxu0 }
 0xf5c   :  { %v1760_v7 = vadd.f32 %v3894_v6, %v3544_v41  ;;  %v1754_v8 = vpop.f32.mrb[15].mxu0 }
 0xf5d   :  { %v1755_v9 = vadd.f32 %v3544_v41, %v1754_v8 }
 0xf5f   :  { %3899 = vmatprep.mubr.msk.f32.mxu0 %vm222_vm1, %v1755_v9  ;;  %v4825_v10 = vpack.i.bf16 %v1760_v7, %v1755_v9 }
 0xf61   :  { %4280 = vrot.lane.b32.xlu1 %v4825_v10, %s4433_s30  ;;  %4275 = vrot.lane.b32.xlu0 %v4825_v10, %s4432_s4  ;;  %s5113_s4 = smov 112   ;;  %s5114_s30 = smov 72  }
 0xf65   :  { %2061 = vrot.lane.b32.xlu1 %v1755_v9, %s4434_s5 }
 0xf69   :  { %2063 = vrot.lane.b32.xlu1 %v1760_v7, %s4434_s5  ;;  %s5115_s5 = smov 104  }
 0xfd3   :  { %v4281_v11 = vpop.permute.xlu1 %4280  ;;  %v4276_v12 = vpop.permute.xlu0 %4275 }
 0xfd4   :  { %v4283_v13 = vunpack.i.h.bf16 %v4281_v11  ;;  %v4282_v14 = vunpack.i.l.bf16 %v4281_v11  ;;  %v4278_v15 = vunpack.i.h.bf16 %v4276_v12  ;;  %v4277_v16 = vunpack.i.l.bf16 %v4276_v12 }
 0xfd6   :  { %v4118_v17 = vpack.c.bf16 %v4278_v15, %v4277_v16  ;;  %v4128_v18 = vpack.c.bf16 %v4283_v13, %v4282_v14 }
 0xfd7   :  { %v2062_v19 = vpop.permute.xlu1 %2061 }
 0xfd8   :  { %4120 = vmatprep.subr.msk.bf16.mxu0 %vm4618_vm2, %v4118_v17 }
 0xfd9   :  { %4123 = vmatpush3.bf16.xpose.msk.msra.mxu0 %vm4618_vm2, %v4118_v17 }
 0xfda   :  { %4130 = vmatprep.subr.msk.bf16.mxu0 %vm4618_vm2, %v4128_v18 }
 0xfdb   :  { %v2064_v20 = vpop.permute.xlu1 %2063 }
 0xfe0   :  { %3900 = vmatmul.mubr.msk.f32.vlgmr.msra.gmra.mrb[16].mxu0 %vm222_vm1, %v1760_v7 }
 0xfe1   :  { %4133 = vmatpush3.bf16.xpose.msk.msra.mxu0 %vm4618_vm2, %v4128_v18  ;;  %3918 = vmatprep.mubr.msk.f32.mxu0 %vm222_vm1, %v2062_v19 }
 0xfe8   :  { %3919 = vmatmul.mubr.msk.f32.vlgmr.msra.gmra.mrb[18].mxu0 %vm222_vm1, %v2064_v20 }
0x10b3   :  { %v3901_v21 = vpop.f32.mrb[16].mxu0 }
0x10b4   :  { %v1860_v22 = vmul.f32 0.35355338, %v3901_v21  ;;  %v1850_v23 = vpop.f32.mrb[17].mxu0  ;;  %v4406_v21 = vld [vmem:[%s5111_s24 + $0x8] sm:$0xff] }
0x10b5   :  { %v1859_v24 = vmul.f32 0.35355338, %v1850_v23 }
0x10b6   :  { %v1862_v25 = vadd.f32 %v1860_v22, %v4636_v52 }
0x10b7   :  { %v1861_v26 = vadd.f32 %v1859_v24, %v4631_v49  ;;  %v3547_v24 = vld [vmem:[%s5071_s7 + $0x20] sm:$0xff] }
0x10b8   :  { %v1866_v27 = vsel %vm310_vm3, %v1862_v25, -inf }
0x10b9   :  { %1867 = vmax.xlane.f32.xlu1 %v1866_v27  ;;  %v1863_v35 = vsel %vm310_vm3, %v1861_v26, -inf }
0x10ba   :  { %1864 = vmax.xlane.f32.xlu0 %v1863_v35 }
0x10bb   :  { %v3920_v33 = vpop.f32.mrb[18].mxu0 }
0x10bc   :  { %v2143_v28 = vpop.f32.mrb[19].mxu0  ;;  %v2153_v29 = vmul.f32 0.35355338, %v3920_v33 }
0x10bd   :  { %v2152_v40 = vmul.f32 0.35355338, %v2143_v28 }
0x10be   :  { %v2155_v30 = vadd.f32 %v2153_v29, %v4636_v52 }
0x10bf   :  { %v2154_v62 = vadd.f32 %v2152_v40, %v4631_v49 }
0x10c0   :  { %v2159_v31 = vsel %vm310_vm3, %v2155_v30, -inf }
0x10c1   :  { %v2156_v63 = vsel %vm310_vm3, %v2154_v62, -inf }
0x10ca   :  { %4290 = vrot.lane.b32.xlu1 %v4825_v10, %s5112_s6 }
0x10ce   :  { %2348 = vrot.lane.b32.xlu1 %v1755_v9, %s5113_s4 }
0x10d2   :  { %2350 = vrot.lane.b32.xlu1 %v1760_v7, %s5113_s4 }
0x10f6   :  { %2160 = vmax.xlane.f32.xlu1 %v2159_v31 }
0x1107   :  { %4300 = vrot.lane.b32.xlu1 %v4825_v10, %s5114_s30 }
0x110b   :  { %2635 = vrot.lane.b32.xlu1 %v1755_v9, %s5115_s5 }
0x110f   :  { %2637 = vrot.lane.b32.xlu1 %v1760_v7, %s5115_s5 }
0x1146   :  { %v1868_v32 = vpop.xlane.xlu1 %1867 }
0x1147   :  { %v1870_v34 = vsub.f32 %v1862_v25, %v1868_v32  ;;  %v1865_v36 = vpop.xlane.xlu0 %1864 }
0x1148   :  { %v1869_v37 = vsub.f32 %v1861_v26, %v1865_v36  ;;  %v4407_v26 = vld [vmem:[%s5111_s24] sm:$0xff] }
0x1149   :  { %v1873_v39 = vmul.f32 1.442695, %v1870_v34 }
0x114a   :  { %v1871_v42 = vmul.f32 1.442695, %v1869_v37  ;;  %v4291_v43 = vpop.permute.xlu1 %4290 }
0x114b   :  { %4362 = vpow2.f32 %v1873_v39  ;;  %v4293_v44 = vunpack.i.h.bf16 %v4291_v43  ;;  %v4292_v52 = vunpack.i.l.bf16 %v4291_v43 }
0x114c   :  { %4364 = vpow2.f32 %v1871_v42 }
0x114d   :  { %v4138_v46 = vpack.c.bf16 %v4293_v44, %v4292_v52 }
0x114e   :  { %v2349_v47 = vpop.permute.xlu1 %2348 }
0x114f   :  { %4140 = vmatprep.subr.msk.bf16.mxu0 %vm4618_vm2, %v4138_v46  ;;  %3937 = vmatprep.mubr.msk.f32.mxu0 %vm222_vm1, %v2349_v47 }
0x1150   :  { %4143 = vmatpush3.bf16.xpose.msk.msra.mxu0 %vm4618_vm2, %v4138_v46 }
0x1152   :  { %v2351_v50 = vpop.permute.xlu1 %2350 }
0x1155   :  { %v4363_v48 = vpop.eup %4362 }
0x1156   :  { %v1878_v51 = vsel %vm310_vm3, %v4363_v48, 0.0  ;;  %v4365_v53 = vpop.eup %4364 }
0x1157   :  { %3938 = vmatmul.mubr.msk.f32.vlgmr.msra.gmra.mrb[20].mxu0 %vm222_vm1, %v2351_v50  ;;  %1879 = vadd.xlane.f32.xlu0 %v1878_v51  ;;  %v1875_v54 = vsel %vm310_vm3, %v4365_v53, 0.0 }
0x115b   :  { %1876 = vadd.xlane.f32.xlu0 %v1875_v54 }
0x1171   :  { %4285 = vrot.lane.b32.xlu0 %v4825_v10, %s5116_s25 }
0x1183   :  { %v2161_v55 = vpop.xlane.xlu1 %2160 }
0x1184   :  { %v2163_v56 = vsub.f32 %v2155_v30, %v2161_v55 }
0x1186   :  { %v2166_v57 = vmul.f32 1.442695, %v2163_v56 }
0x1187   :  { %v4301_v58 = vpop.permute.xlu1 %4300 }
0x1188   :  { %4366 = vpow2.f32 %v2166_v57  ;;  %v4303_v38 = vunpack.i.h.bf16 %v4301_v58  ;;  %v4302_v59 = vunpack.i.l.bf16 %v4301_v58 }
0x118a   :  { %v4148_v60 = vpack.c.bf16 %v4303_v38, %v4302_v59 }
0x118b   :  { %v2636_v61 = vpop.permute.xlu1 %2635 }
0x118c   :  { %4150 = vmatprep.subr.msk.bf16.mxu0 %vm4618_vm2, %v4148_v60  ;;  %3956 = vmatprep.mubr.msk.f32.mxu0 %vm222_vm1, %v2636_v61 }
0x118d   :  { %4153 = vmatpush3.bf16.xpose.msk.msra.mxu0 %vm4618_vm2, %v4148_v60 }
0x118f   :  { %v2638_v1 = vpop.permute.xlu1 %2637 }
0x1190   :  { %2157 = vmax.xlane.f32.xlu0 %v2156_v63 }
0x1192   :  { %v4875_v0 = vpop.eup %4366 }
0x1193   :  { %v2171_v2 = vsel %vm310_vm3, %v4875_v0, 0.0 }
0x1194   :  { %3957 = vmatmul.mubr.msk.f32.vlgmr.msra.gmra.mrb[22].mxu0 %vm222_vm1, %v2638_v1  ;;  %2172 = vadd.xlane.f32.xlu0 %v2171_v2 }
0x11e4   :  { %v1880_v49 = vpop.xlane.xlu0 %1879 }
0x11e5   :  { %4368 = vrcp.f32 %v1880_v49 }
0x11e8   :  { %v1877_v4 = vpop.xlane.xlu0 %1876 }
0x11e9   :  { %4370 = vrcp.f32 %v1877_v4 }
0x11ec   :  { %v4286_v41 = vpop.permute.xlu0 %4285 }
0x11ed   :  { %v4288_v6 = vunpack.i.h.bf16 %v4286_v41  ;;  %v4287_v45 = vunpack.i.l.bf16 %v4286_v41 }
0x11ef   :  { %v4124_v7 = vpack.c.bf16 %v4288_v6, %v4287_v45  ;;  %v4369_v8 = vpop.eup %4368 }
0x11f0   :  { %v1884_v12 = vmul.f32 %v4369_v8, %v4363_v48 }
0x11f1   :  { %4125 = vmatprep.subr.bf16.mxu1 %v4124_v7 }
0x11f2   :  { %4127 = vmatpush3.bf16.msra.mxu1 %v4124_v7  ;;  %v3548_v7 = vld [vmem:[%s5071_s7 + $0x28] sm:$0xff] }
0x11f3   :  { %v4371_v9 = vpop.eup %4370  ;;  %3909 = vmatprep.subr.mxu1 %v3547_v24 }
0x11f4   :  { %v1883_v11 = vmul.f32 %v4371_v9, %v4365_v53 }
0x11f6   :  { %3906 = vmatprep.mubr.msk.f32.mxu1 %vm310_vm3, %v1883_v11 }
0x11f7   :  { %3907 = vmatmul.mubr.msk.f32.vlgmr.msra.gmra.mrb[10].mxu1 %vm310_vm3, %v1884_v12 }
0x11f8   :  { %3910 = vmatpush3.msra.mxu1 %v3547_v24 }
0x121d   :  { %v2158_v13 = vpop.xlane.xlu0 %2157 }
0x121e   :  { %v2162_v14 = vsub.f32 %v2154_v62, %v2158_v13 }
0x1220   :  { %v2164_v15 = vmul.f32 1.442695, %v2162_v14 }
0x1221   :  { %v2173_v37 = vpop.xlane.xlu0 %2172 }
0x1222   :  { %4372 = vpow2.f32 %v2164_v15 }
0x122a   :  { %v3939_v16 = vpop.f32.mrb[20].mxu0 }
0x122b   :  { %v2440_v17 = vmul.f32 0.35355338, %v3939_v16  ;;  %v2430_v18 = vpop.f32.mrb[21].mxu0 }
0x122c   :  { %v4373_v19 = vpop.eup %4372  ;;  %v2439_v25 = vmul.f32 0.35355338, %v2430_v18 }
0x122d   :  { %v2168_v20 = vsel %vm310_vm3, %v4373_v19, 0.0  ;;  %v2442_v22 = vadd.f32 %v4406_v21, %v2440_v17 }
0x122e   :  { %2169 = vadd.xlane.f32.xlu0 %v2168_v20  ;;  %v2441_v27 = vadd.f32 %v4407_v26, %v2439_v25 }
0x122f   :  { %v2446_v23 = vsel %vm310_vm3, %v2442_v22, -inf }
0x1230   :  { %2447 = vmax.xlane.f32.xlu1 %v2446_v23  ;;  %v2443_v35 = vsel %vm310_vm3, %v2441_v27, -inf }
0x1244   :  { %4295 = vrot.lane.b32.xlu0 %v4825_v10, %s5117_s26 }
0x1263   :  { %2444 = vmax.xlane.f32.xlu0 %v2443_v35 }
0x1267   :  { %v3958_v33 = vpop.f32.mrb[22].mxu0 }
0x1268   :  { %v2717_v28 = vpop.f32.mrb[23].mxu0  ;;  %v2727_v29 = vmul.f32 0.35355338, %v3958_v33 }
0x1269   :  { %v2726_v30 = vmul.f32 0.35355338, %v2717_v28 }
0x126a   :  { %v2729_v34 = vadd.f32 %v4406_v21, %v2727_v29 }
0x126b   :  { %v2728_v31 = vadd.f32 %v4407_v26, %v2726_v30  ;;  %v3550_v30 = vld [vmem:[%s5071_s7 + $0x38] sm:$0xff] }
0x126c   :  { %v2733_v36 = vsel %vm310_vm3, %v2729_v34, -inf }
0x126d   :  { %v2730_v32 = vsel %vm310_vm3, %v2728_v31, -inf }
0x126e   :  { %2731 = vmax.xlane.f32.xlu1 %v2730_v32 }
0x1272   :  { %2734 = vmax.xlane.f32.xlu1 %v2733_v36  ;;  %v3560_v36 = vld [vmem:[%s5072_s8 + $0x1] ss:$0 sm:$0xff] }
0x12bb   :  { %v2170_v39 = vpop.xlane.xlu0 %2169 }
0x12bc   :  { %4374 = vrcp.f32 %v2170_v39 }
0x12bd   :  { %v2448_v42 = vpop.xlane.xlu1 %2447  ;;  %4376 = vrcp.f32 %v2173_v37 }
0x12be   :  { %v2450_v43 = vsub.f32 %v2442_v22, %v2448_v42 }
0x12bf   :  { %v4296_v44 = vpop.permute.xlu0 %4295 }
0x12c0   :  { %v2453_v52 = vmul.f32 1.442695, %v2450_v43  ;;  %v4298_v46 = vunpack.i.h.bf16 %v4296_v44  ;;  %v4297_v47 = vunpack.i.l.bf16 %v4296_v44 }
0x12c2   :  { %4378 = vpow2.f32 %v2453_v52  ;;  %v4134_v48 = vpack.c.bf16 %v4298_v46, %v4297_v47 }
0x12c4   :  { %4135 = vmatprep.subr.bf16.mxu1 %v4134_v48 }
0x12c6   :  { %v4375_v50 = vpop.eup %4374 }
0x12c7   :  { %v4377_v53 = vpop.eup %4376  ;;  %v2176_v57 = vmul.f32 %v4375_v50, %v4373_v19 }
0x12c8   :  { %v2177_v40 = vmul.f32 %v4377_v53, %v4875_v0 }
0x12ca   :  { %v3908_v51 = vpop.f32.mrb[10].mxu1 }
0x12cb   :  { %v1963_v54 = vpop.f32.mrb[11].mxu1 }
0x12cc   :  { %v4379_v55 = vpop.eup %4378  ;;  %3911 = vmatprep.mubr.msk.f32.mxu1 %vm222_vm1, %v1963_v54 }
0x12cd   :  { %3912 = vmatmul.mubr.msk.f32.vlgmr.msra.gmra.mrb[12].mxu1 %vm222_vm1, %v3908_v51  ;;  %v2458_v56 = vsel %vm310_vm3, %v4379_v55, 0.0 }
0x12ce   :  { %4137 = vmatpush3.bf16.msra.mxu1 %v4134_v48  ;;  %2459 = vadd.xlane.f32.xlu0 %v2458_v56 }
0x12cf   :  { %3925 = vmatprep.mubr.msk.f32.mxu1 %vm310_vm3, %v2176_v57  ;;  %3928 = vmatprep.subr.mxu1 %v3548_v7 }
0x12d1   :  { %3926 = vmatmul.mubr.msk.f32.vlgmr.msra.gmra.mrb[14].mxu1 %vm310_vm3, %v2177_v40 }
0x12d2   :  { %3929 = vmatpush3.msra.mxu1 %v3548_v7 }
0x12f0   :  { %v2445_v58 = vpop.xlane.xlu0 %2444 }
0x12f1   :  { %v2449_v38 = vsub.f32 %v2441_v27, %v2445_v58  ;;  %v3590_v58 = vld [vmem:[%s5075_s11 + $0x28] sm:$0xff] }
0x12f3   :  { %v2451_v59 = vmul.f32 1.442695, %v2449_v38 }
0x12f5   :  { %4380 = vpow2.f32 %v2451_v59  ;;  %v3591_v59 = vld [vmem:[%s5075_s11 + $0x30] sm:$0xff] }
0x12fb   :  { %v2732_v60 = vpop.xlane.xlu1 %2731 }
0x12fc   :  { %v2736_v61 = vsub.f32 %v2728_v31, %v2732_v60  ;;  %v3592_v60 = vld [vmem:[%s5075_s11 + $0x38] sm:$0xff] }
0x12fe   :  { %v2738_v49 = vmul.f32 1.442695, %v2736_v61  ;;  %v4162_v61 = vpack.c.bf16 %v3592_v60, %v3591_v59 }
0x12ff   :  { %v4381_v62 = vpop.eup %4380  ;;  %v2735_v63 = vpop.xlane.xlu1 %2734 }
0x1300   :  { %v2737_v1 = vsub.f32 %v2729_v34, %v2735_v63  ;;  %v2455_v2 = vsel %vm310_vm3, %v4381_v62, 0.0 }
0x1301   :  { %2456 = vadd.xlane.f32.xlu0 %v2455_v2 }
0x1302   :  { %v2740_v4 = vmul.f32 1.442695, %v2737_v1 }
0x1304   :  { %4382 = vpow2.f32 %v2740_v4 }
0x1305   :  { %4384 = vpow2.f32 %v2738_v49 }
0x130e   :  { %v4383_v0 = vpop.eup %4382 }
0x130f   :  { %v2745_v41 = vsel %vm310_vm3, %v4383_v0, 0.0  ;;  %v4385_v6 = vpop.eup %4384 }
0x1310   :  { %2746 = vadd.xlane.f32.xlu1 %v2745_v41  ;;  %v2742_v45 = vsel %vm310_vm3, %v4385_v6, 0.0  ;;  %v3587_v41 = vld [vmem:[%s5073_s9 + $0x1] ss:$0 sm:$0xff] }
0x1314   :  { %2743 = vadd.xlane.f32.xlu1 %v2742_v45  ;;  %v3588_v45 = vld [vmem:[%s5074_s10 + $0x1] ss:$0 sm:$0xff]  ;;  %s4446_s10 = smov [#allocation2]  }
0x1315   :  { %s3483_s30 = sshll.u32 %s4446_s10, 4  ;;  %s3484_s30 = int_to_ptr.vmem [resolvable:$true] %s3483_s30 }
0x1316   :  { %p4413_p1 = scmp.lt.s32.totalorder %s3484_s30, %s3484_s30 }
0x1317   :  { %4305 = vrot.lane.b32.xlu0 %v4825_v10, %s5118_s0 }
0x1325   :  { %4310 = vrot.lane.b32.xlu1 %v4825_v10, %s5119_s2  ;;  %v3549_v10 = vld [vmem:[%s5071_s7 + $0x30] sm:$0xff]  ;;  %s5120_s7 = sld [smem:[#allocation7_spill]] }
0x135b   :  { %v2460_v8 = vpop.xlane.xlu0 %2459 }
0x138e   :  { %v2457_v9 = vpop.xlane.xlu0 %2456 }
0x138f   :  { %4386 = vrcp.f32 %v2457_v9 }
0x1390   :  { %4388 = vrcp.f32 %v2460_v8 }
0x1392   :  { %v4306_v11 = vpop.permute.xlu0 %4305 }
0x1393   :  { %v4308_v12 = vunpack.i.h.bf16 %v4306_v11  ;;  %v4307_v13 = vunpack.i.l.bf16 %v4306_v11 }
0x1395   :  { %v4144_v14 = vpack.c.bf16 %v4308_v12, %v4307_v13 }
0x1397   :  { %4145 = vmatprep.subr.bf16.mxu1 %v4144_v14 }
0x1399   :  { %v4387_v17 = vpop.eup %4386 }
0x139a   :  { %v4389_v21 = vpop.eup %4388  ;;  %v2463_v22 = vmul.f32 %v4387_v17, %v4381_v62  ;;  %v3599_v17 = vld [vmem:[%s5077_s13 + $0x50] sm:$0xff] }
0x139b   :  { %v2464_v25 = vmul.f32 %v4389_v21, %v4379_v55  ;;  %v3602_v21 = vld [vmem:[%s5077_s13 + $0x68] sm:$0xff] }
0x139d   :  { %v2747_v15 = vpop.xlane.xlu1 %2746 }
0x13a1   :  { %v2744_v16 = vpop.xlane.xlu1 %2743 }
0x13a2   :  { %4390 = vrcp.f32 %v2744_v16 }
0x13a3   :  { %4392 = vrcp.f32 %v2747_v15  ;;  %v3598_v15 = vld [vmem:[%s5077_s13 + $0x48] sm:$0xff] }
0x13a4   :  { %v3927_v18 = vpop.f32.mrb[14].mxu1 }
0x13a5   :  { %v4311_v19 = vpop.permute.xlu1 %4310  ;;  %v2256_v20 = vpop.f32.mrb[15].mxu1 }
0x13a6   :  { %3930 = vmatprep.mubr.msk.f32.mxu1 %vm222_vm1, %v2256_v20  ;;  %v4313_v23 = vunpack.i.h.bf16 %v4311_v19  ;;  %v4312_v24 = vunpack.i.l.bf16 %v4311_v19  ;;  %v3601_v20 = vld [vmem:[%s5077_s13 + $0x60] sm:$0xff] }
0x13a7   :  { %3931 = vmatmul.mubr.msk.f32.vlgmr.msra.gmra.mrb[12].mxu1 %vm222_vm1, %v3927_v18  ;;  %v3600_v18 = vld [vmem:[%s5077_s13 + $0x58] sm:$0xff] }
0x13a8   :  { %4147 = vmatpush3.bf16.msra.mxu1 %v4144_v14  ;;  %3944 = vmatprep.mubr.msk.f32.mxu1 %vm310_vm3, %v2463_v22  ;;  %v4154_v26 = vpack.c.bf16 %v4313_v23, %v4312_v24  ;;  %v3597_v14 = vld [vmem:[%s5077_s13 + $0x40] sm:$0xff]  ;;  %v4170_v19 = vpack.c.bf16 %v3600_v18, %v3599_v17  ;;  %v4174_v22 = vpack.c.bf16 %v3602_v21, %v3601_v20  ;;  %v3604_v23 = vld [vmem:[%s5077_s13 + $0x78] sm:$0xff] }
0x13a9   :  { %3947 = vmatprep.subr.mxu1 %v3549_v10  ;;  %v4166_v16 = vpack.c.bf16 %v3598_v15, %v3597_v14  ;;  %v3611_v20 = vld [vmem:[%s5079_s15 + $0x1] ss:$0 sm:$0xff] }
0x13ab   :  { %3945 = vmatmul.mubr.msk.f32.vlgmr.msra.gmra.mrb[16].mxu1 %vm310_vm3, %v2464_v25  ;;  %v3594_v25 = vld [vmem:[%s5076_s12 + $0x1] ss:$0 sm:$0xff] }
0x13ac   :  { %3948 = vmatpush3.msra.mxu1 %v3549_v10  ;;  %v4391_v27 = vpop.eup %4390  ;;  %v3603_v10 = vld [vmem:[%s5077_s13 + $0x70] sm:$0xff] }
0x13ad   :  { %4155 = vmatprep.subr.bf16.mxu1 %v4154_v26  ;;  %v4393_v28 = vpop.eup %4392  ;;  %v2750_v29 = vmul.f32 %v4391_v27, %v4385_v6  ;;  %v4178_v24 = vpack.c.bf16 %v3604_v23, %v3603_v10  ;;  %v3612_v23 = vld [vmem:[%s5080_s16 + $0x1] ss:$0 sm:$0xff] }
0x13ae   :  { %v2751_v31 = vmul.f32 %v4393_v28, %v4383_v0 }
0x147e   :  { %v3946_v35 = vpop.f32.mrb[16].mxu1 }
0x147f   :  { %v2543_v33 = vpop.f32.mrb[17].mxu1 }
0x1480   :  { %3949 = vmatprep.mubr.msk.f32.mxu1 %vm222_vm1, %v2543_v33 }
0x1481   :  { %3950 = vmatmul.mubr.msk.f32.vlgmr.msra.gmra.mrb[12].mxu1 %vm222_vm1, %v3946_v35 }
0x1482   :  { %4157 = vmatpush3.bf16.msra.mxu1 %v4154_v26  ;;  %3963 = vmatprep.mubr.msk.f32.mxu1 %vm310_vm3, %v2750_v29 }
0x1483   :  { %3966 = vmatprep.subr.mxu1 %v3550_v30 }
0x1485   :  { %3964 = vmatmul.mubr.msk.f32.vlgmr.msra.gmra.mrb[18].mxu1 %vm310_vm3, %v2751_v31 }
0x1486   :  { %3967 = vmatpush3.msra.mxu1 %v3550_v30 }
0x1487   :  { %4167 = vmatprep.subr.bf16.mxu1 %v4166_v16 }
0x1558   :  { %v3965_v32 = vpop.f32.mrb[18].mxu1 }
0x1559   :  { %v2830_v34 = vpop.f32.mrb[19].mxu1 }
0x155a   :  { %3968 = vmatprep.mubr.msk.f32.mxu1 %vm222_vm1, %v2830_v34 }
0x155b   :  { %3969 = vmatmul.mubr.msk.f32.vlgmr.msra.gmra.mrb[12].mxu1 %vm222_vm1, %v3965_v32 }
0x155c   :  { %4169 = vmatpush3.bf16.msra.mxu1 %v4166_v16 }
0x155d   :  { %4171 = vmatprep.subr.bf16.mxu1 %v4170_v19 }
0x1560   :  { %4173 = vmatpush3.bf16.msra.mxu1 %v4170_v19 }
0x1561   :  { %4175 = vmatprep.subr.bf16.mxu1 %v4174_v22 }
0x1564   :  { %4177 = vmatpush3.bf16.msra.mxu1 %v4174_v22 }
0x1565   :  { %4179 = vmatprep.subr.bf16.mxu1 %v4178_v24 }
0x1568   :  { %4181 = vmatpush3.bf16.msra.mxu1 %v4178_v24 }
0x162e   :  { %v3970_v37 = vpop.f32.mrb[12].mxu1 }
0x162f   :  { %v4205_v39 = vadd.f32 %v3970_v37, %v3560_v36  ;;  %v2911_v42 = vpop.f32.mrb[13].mxu1 }
0x1630   :  { %v4206_v43 = vadd.f32 %v3560_v36, %v2911_v42 }
0x1631   :  { %v2923_v44 = vadd.f32 %v4205_v39, %v4817_v5 }
0x1632   :  { %v2922_v52 = vadd.f32 %v4206_v43, %v4813_v3  ;;  %v3589_v3 = vld [vmem:[%s5075_s11 + $0x20] sm:$0xff] }
0x1633   :  { %v2931_v46 = vsel %vm75_vm0, %v2923_v44, 0.0  ;;  %v4158_v38 = vpack.c.bf16 %v3590_v58, %v3589_v3 }
0x1634   :  { %2932 = vadd.xlane.f32.xlu1 %v2931_v46  ;;  %v2928_v47 = vsel %vm75_vm0, %v2922_v52, 0.0 }
0x1635   :  { %2929 = vadd.xlane.f32.xlu0 %v2928_v47  ;;  %4159 = vmatprep.subr.bf16.mxu0 %v4158_v38 }
0x1636   :  { %4161 = vmatpush3.bf16.msra.mxu0 %v4158_v38 }
0x1637   :  { %4163 = vmatprep.subr.bf16.mxu0 %v4162_v61 }
0x163a   :  { %4165 = vmatpush3.bf16.msra.mxu0 %v4162_v61 }
0x16c1   :  { %v2933_v48 = vpop.xlane.xlu1 %2932 }
0x16c2   :  { %v2935_v50 = vmul.f32 0.03125, %v2933_v48  ;;  %v2930_v51 = vpop.xlane.xlu0 %2929 }
0x16c3   :  { %v2934_v53 = vmul.f32 0.03125, %v2930_v51 }
0x16c4   :  { %v2937_v54 = vsub.f32 %v2923_v44, %v2935_v50 }
0x16c5   :  { %v2936_v55 = vsub.f32 %v2922_v52, %v2934_v53  ;;  %v3606_v53 = vld [vmem:[%s5078_s14 + $0x1] ss:$0 sm:$0xff] }
0x16c6   :  { %v2939_v40 = vmul.f32 %v2937_v54, %v2937_v54 }
0x16c7   :  { %v2938_v56 = vmul.f32 %v2936_v55, %v2936_v55 }
0x16c8   :  { %v2943_v5 = vsel %vm75_vm0, %v2939_v40, 0.0 }
0x16c9   :  { %v2940_v57 = vsel %vm75_vm0, %v2938_v56, 0.0 }
0x16ca   :  { %2941 = vadd.xlane.f32.xlu0 %v2940_v57 }
0x16ce   :  { %2944 = vadd.xlane.f32.xlu0 %v2943_v5 }
0x1757   :  { %v2942_v62 = vpop.xlane.xlu0 %2941 }
0x1758   :  { %v2946_v63 = vmul.f32 0.03125, %v2942_v62 }
0x175a   :  { %v2948_v1 = vadd.f32 1e-12, %v2946_v63 }
0x175b   :  { %v2945_v2 = vpop.xlane.xlu0 %2944 }
0x175c   :  { %4394 = vrsqrt.f32 %v2948_v1  ;;  %v2947_v49 = vmul.f32 0.03125, %v2945_v2 }
0x175e   :  { %v2949_v4 = vadd.f32 1e-12, %v2947_v49 }
0x1760   :  { %4396 = vrsqrt.f32 %v2949_v4 }
0x1766   :  { %v4395_v0 = vpop.eup %4394 }
0x1767   :  { %v2952_v6 = vmul.f32 %v4395_v0, %v2936_v55  ;;  %v4443_v0 = vmov 0.0|0.0  }
0x1768   :  { %4182 = vmatprep.subr.bf16.mxu1 %v4443_v0  ;;  %4185 = vmatprep.subr.bf16.mxu0 %v4443_v0 }
0x1769   :  { %v2960_v7 = vmul.f32 %v3587_v41, %v2952_v6  ;;  %v3302_v6 = vld [vmem:[%s5081_s17] sm:$0xff] }
0x176a   :  { %v4397_v8 = vpop.eup %4396 }
0x176b   :  { %v2953_v9 = vmul.f32 %v4397_v8, %v2937_v54  ;;  %v2968_v11 = vadd.f32 %v3588_v45, %v2960_v7  ;;  %v3304_v7 = vld [vmem:[%s5081_s17 + $0x10] sm:$0xff] }
0x176d   :  { %v2961_v12 = vmul.f32 %v3587_v41, %v2953_v9  ;;  %3979 = vmatprep.mubr.msk.f32.mxu0 %vm75_vm0, %v2968_v11  ;;  %v4445_v41 = vmov 0.0   ;;  %v3305_v9 = vld [vmem:[%s5081_s17 + $0x18] sm:$0xff] }
0x176f   :  { %v2969_v13 = vadd.f32 %v3588_v45, %v2961_v12  ;;  %v3303_v45 = vld [vmem:[%s5081_s17 + $0x8] sm:$0xff] }
0x1770   :  { %v4186_v8 = vpack.c.bf16 %v3303_v45, %v3302_v6 }
0x1771   :  { %3980 = vmatmul.mubr.msk.f32.vlgmr.msra.gmra.mrb[24].mxu0 %vm75_vm0, %v2969_v13 }
0x1772   :  { %4016 = vmatprep.mubr.msk.f32.mxu0 %vm4444_vm5, %v4445_v41  ;;  %4187 = vmatpush3.bf16.msra.mxu0 %v4186_v8 }
0x1773   :  { %4188 = vmatprep.subr.bf16.mxu0 %v4443_v0 }
0x1844   :  { %v3981_v26 = vpop.f32.mrb[24].mxu0 }
0x1845   :  { %v3061_v27 = vadd.f32 %v3981_v26, %v3594_v25  ;;  %v3055_v35 = vpop.f32.mrb[25].mxu0 }
0x1846   :  { %v3056_v33 = vadd.f32 %v3594_v25, %v3055_v35  ;;  %v3228_v35 = vld [vmem:[%s5120_s7] sm:$0x3] }
0x1847   :  { %v3067_v28 = vmul.f32 0.044715, %v3061_v27  ;;  %v3065_v48 = vmul.f32 0.5, %v3061_v27 }
0x1848   :  { %v3066_v29 = vmul.f32 0.044715, %v3056_v33  ;;  %v3064_v46 = vmul.f32 0.5, %v3056_v33 }
0x1849   :  { %v3069_v30 = vmul.f32 %v3067_v28, %v3061_v27  ;;  %v3388_v28 = vld [vmem:[%s5083_s19 + $0x8] sm:$0xff] }
0x184a   :  { %v3068_v31 = vmul.f32 %v3066_v29, %v3056_v33  ;;  %v3389_v29 = vld [vmem:[%s5083_s19 + $0x10] sm:$0xff] }
0x184b   :  { %v3071_v32 = vmul.f32 %v3069_v30, %v3061_v27 }
0x184c   :  { %v3070_v34 = vmul.f32 %v3068_v31, %v3056_v33  ;;  %v3390_v31 = vld [vmem:[%s5083_s19 + $0x18] sm:$0xff] }
0x184d   :  { %v3073_v36 = vadd.f32 %v3071_v32, %v3061_v27  ;;  %v4195_v32 = vpack.c.bf16 %v3390_v31, %v3389_v29 }
0x184e   :  { %v3072_v37 = vadd.f32 %v3070_v34, %v3056_v33  ;;  %v3387_v33 = vld [vmem:[%s5083_s19] sm:$0xff] }
0x184f   :  { %v3075_v39 = vmul.f32 0.7978846, %v3073_v36  ;;  %v4192_v30 = vpack.c.bf16 %v3388_v28, %v3387_v33  ;;  %v3391_v34 = vld [vmem:[%s5083_s19 + $0x20] sm:$0xff]  ;;  %v3392_v36 = vld [vmem:[%s5083_s19 + $0x28] sm:$0xff] }
0x1850   :  { %v3074_v42 = vmul.f32 0.7978846, %v3072_v37  ;;  %v4198_v37 = vpack.c.bf16 %v3392_v36, %v3391_v34 }
0x1851   :  { %4398 = vtanh.f32 %v3075_v39 }
0x1852   :  { %4400 = vtanh.f32 %v3074_v42 }
0x185b   :  { %v4399_v43 = vpop.eup %4398 }
0x185c   :  { %v4401_v44 = vpop.eup %4400  ;;  %v3079_v52 = vadd.f32 1.0, %v4399_v43  ;;  %v3393_v43 = vld [vmem:[%s5083_s19 + $0x30] sm:$0xff] }
0x185d   :  { %v3078_v47 = vadd.f32 1.0, %v4401_v44  ;;  %v3394_v44 = vld [vmem:[%s5083_s19 + $0x38] sm:$0xff]  ;;  %s4408_s19 = scalar_lea.vmem %s3484_s30, 32 }
0x185e   :  { %v3081_v51 = vmul.f32 %v3079_v52, %v3065_v48  ;;  %v4201_v52 = vpack.c.bf16 %v3394_v44, %v3393_v43  ;;  %p4409_p0 = scmp.ne.s32.totalorder %s3484_s30, %s4408_s19  ;;  %p4414_p2 = scmp.lt.s32.totalorder %s4408_s19, %s4408_s19 }
0x185f   :  { %v3080_v50 = vmul.f32 %v3078_v47, %v3064_v46  ;;  %v3614_v46 = vld [vmem:[%s5082_s18] ss:$0 sm:$0xff] }
0x1860   :  { %p4415_p3 = por %p4414_p2, %p4413_p1 }
0x1861   :  { %3998 = vmatprep.mubr.msk.f32.mxu1 %vm1541_vm4, %v3080_v50 }
0x1862   :  { %3999 = vmatmul.mubr.msk.f32.vlgmr.msra.gmra.mrb[20].mxu1 %vm1541_vm4, %v3081_v51  ;;  %p4416_p4 = pnand %p4415_p3, %p4409_p0 }
0x1863   :  { %4005 = vmatprep.mubr.msk.f32.mxu1 %vm4444_vm5, %v4445_v41 }
0x1935   :  { %v4000_v54 = vpop.f32.mrb[20].mxu1 }
0x1936   :  { %v3171_v55 = vpop.f32.mrb[21].mxu1  ;;  %v3177_v56 = vadd.f32 %v4000_v54, %v3606_v53 }
0x1937   :  { %v3172_v57 = vadd.f32 %v3606_v53, %v3171_v55  ;;  %v3616_v53 = vld [vmem:[%s5084_s20] ss:$0 sm:$0xff] }
0x1938   :  { %v3181_v3 = vadd.f32 %v3177_v56, %v2969_v13 }
0x1939   :  { %v3180_v40 = vadd.f32 %v3172_v57, %v2968_v11  ;;  %v4189_v11 = vpack.c.bf16 %v3305_v9, %v3304_v7 }
0x193a   :  { %v3189_v58 = vsel %vm75_vm0, %v3181_v3, 0.0 }
0x193b   :  { %v3186_v5 = vsel %vm75_vm0, %v3180_v40, 0.0  ;;  %4190 = vmatpush3.bf16.msra.mxu0 %v4189_v11 }
0x193c   :  { %3187 = vadd.xlane.f32.xlu0 %v3186_v5 }
0x1940   :  { %3190 = vadd.xlane.f32.xlu0 %v3189_v58 }
0x19c9   :  { %v3188_v38 = vpop.xlane.xlu0 %3187 }
0x19ca   :  { %v3192_v59 = vmul.f32 0.03125, %v3188_v38 }
0x19cc   :  { %v3194_v60 = vsub.f32 %v3180_v40, %v3192_v59 }
0x19cd   :  { %v3191_v61 = vpop.xlane.xlu0 %3190 }
0x19ce   :  { %v3193_v62 = vmul.f32 0.03125, %v3191_v61  ;;  %v3196_v63 = vmul.f32 %v3194_v60, %v3194_v60 }
0x19d0   :  { %v3195_v1 = vsub.f32 %v3181_v3, %v3193_v62  ;;  %v3198_v2 = vsel %vm75_vm0, %v3196_v63, 0.0 }
0x19d1   :  { %3199 = vadd.xlane.f32.xlu0 %v3198_v2 }
0x19d2   :  { %v3197_v49 = vmul.f32 %v3195_v1, %v3195_v1 }
0x19d4   :  { %v3201_v4 = vsel %vm75_vm0, %v3197_v49, 0.0 }
0x19d5   :  { %3202 = vadd.xlane.f32.xlu1 %v3201_v4 }
0x1a5e   :  { %v3200_v12 = vpop.xlane.xlu0 %3199 }
0x1a5f   :  { %v3204_v13 = vmul.f32 0.03125, %v3200_v12 }
0x1a61   :  { %v3206_v14 = vadd.f32 1e-12, %v3204_v13 }
0x1a62   :  { %v3203_v15 = vpop.xlane.xlu1 %3202 }
0x1a63   :  { %4402 = vrsqrt.f32 %v3206_v14  ;;  %v3205_v16 = vmul.f32 0.03125, %v3203_v15 }
0x1a65   :  { %v3207_v17 = vadd.f32 1e-12, %v3205_v16 }
0x1a67   :  { %4404 = vrsqrt.f32 %v3207_v17 }
0x1a6d   :  { %v4403_v18 = vpop.eup %4402 }
0x1a6e   :  { %v3210_v19 = vmul.f32 %v4403_v18, %v3194_v60 }
0x1a70   :  { %v3218_v10 = vmul.f32 %v3611_v20, %v3210_v19 }
0x1a71   :  { %v4405_v21 = vpop.eup %4404 }
0x1a72   :  { %v3211_v22 = vmul.f32 %v4405_v21, %v3195_v1  ;;  %v3226_v25 = vadd.f32 %v3612_v23, %v3218_v10 }
0x1a74   :  { %v3219_v24 = vmul.f32 %v3611_v20, %v3211_v22 }
0x1a76   :  { %v3227_v26 = vadd.f32 %v3612_v23, %v3219_v24 }
0x1a78   :  { %v4183_v27 = vpack.c.bf16 %v3227_v26, %v3226_v25 }
0x1a7a   :  { %4184 = vmatpush3.bf16.msra.mxu1 %v4183_v27 }
0x1a7b   :  { %4191 = vmatprep.subr.bf16.mxu1 %v4443_v0 }
0x1a7d   :  { %4006 = vmatmul.mubr.msk.f32.vlgmr.msra.gmra.mrb[22].mxu1 %vm310_vm3, %v3228_v35 }
0x1a7e   :  { %4035 = vmatprep.mubr.msk.f32.mxu1 %vm4444_vm5, %v4445_v41  ;;  %4193 = vmatpush3.bf16.msra.mxu1 %v4192_v30 }
0x1a7f   :  { %4194 = vmatprep.subr.bf16.mxu1 %v4443_v0 }
0x1a82   :  { %4196 = vmatpush3.bf16.msra.mxu1 %v4195_v32 }
0x1a83   :  { %4197 = vmatprep.subr.bf16.mxu1 %v4443_v0 }
0x1a86   :  { %4199 = vmatpush3.bf16.msra.mxu1 %v4198_v37 }
0x1a87   :  { %4200 = vmatprep.subr.bf16.mxu1 %v4443_v0 }
0x1a8a   :  { %4202 = vmatpush3.bf16.msra.mxu1 %v4201_v52 }
0x1b50   :  { %v3298_v39 = vpop.f32.mrb[22].mxu1 }
0x1b51   :  { %v4007_v42 = vpop.f32.mrb[23].mxu1  ;;  %4017 = vmatmul.mubr.msk.f32.vlgmr.msra.gmra.mrb[26].mxu0 %vm75_vm0, %v3298_v39 }
0x1c24   :  { %v3382_v47 = vpop.f32.mrb[26].mxu0 }
0x1c25   :  { %v3383_v48 = vadd.f32 %v3614_v46, %v3382_v47  ;;  %v4018_v50 = vpop.f32.mrb[27].mxu0 }
0x1c27   :  { %v3386_v51 = vmax.f32 %v3383_v48, 0.0 }
0x1c29   :  { %4036 = vmatmul.mubr.msk.f32.vlgmr.msra.gmra.mrb[24].mxu1 %vm1541_vm4, %v3386_v51 }
0x1cfc   :  { %v3471_v54 = vpop.f32.mrb[24].mxu1 }
0x1cfd   :  { %v3472_v55 = vadd.f32 %v3616_v53, %v3471_v54  ;;  %v4037_v56 = vpop.f32.mrb[25].mxu1 }
0x1cff   :  { %3476 = vst.msk [vmem:[#allocation2] sm:$0x3] %vm3475_vm6, %v3472_v55 }
0x1d00   :  { %4419 = shalt.err (!%p4416_p4)
}
0x1d01   :  { %s4420_s5 = scalar_lea.hbm %s5085_s21, 32 }
0x1d02   :  { %p4421_p5 = scmp.ne.s32.totalorder %s5085_s21, %s4420_s5  ;;  %p4424_p6 = scmp.lt.u32.totalorder %s4420_s5, %s5085_s21 }
0x1d04   :  { %p4426_p7 = pnand %p4424_p6, %p4421_p5 }
0x1d06   :  { %4429 = shalt.err (!%p4426_p7)
}
0x1d07   :  { %3486 = dma.vmem_to_hbm [thread:$0]  %s3484_s30, 32, %s5085_s21, [#allocation3]  }
0x1d08   :  { %4430 = dma.done.wait [#allocation3], 32  }
0x1d09   :  { %4431 = vsyncadd [#allocation3], 4294967264 }
0x1d0a   :  { %3490 = vsyncpa [#allocation3], 1 }

</bundles_post_ra>
